<compile_context>
chip_gen: v7x
topology: tpu7x:2x2x1
jax: 0.10.0
libtpu: 0.0.40
codegen_flags: <defaults>
</compile_context>

<pallas_src>
import math

import numpy as np
import jax
import jax.numpy as jnp
from jax import lax
from jax.experimental import pallas as pl
from jax.experimental.pallas import tpu as pltpu


# ---------------------------------------------------------------------------
# Host-side constant builders (tiny, built once at trace time).
# ---------------------------------------------------------------------------
def _pool_select(B, L):
    """0/1 matrix S of shape (B*L//2, B*L) with S[j, 2j] = 1 (stride-2 pick)."""
    BLh = B * L // 2
    sel = np.zeros((BLh, B * L), np.float32)
    j = np.arange(BLh)
    sel[j, 2 * j] = 1.0
    return sel


def _fc_masks(B, L, N):
    """Constant 0/1 matrices for the flatten+Linear head (no in-kernel iota)."""
    BL, NL = B * L, N * L
    r = np.arange(BL)
    c = np.arange(NL)
    diag = (c[None, :] % L == r[:, None] % L).astype(np.float32)          # (BL, NL)
    g_batch = (np.arange(BL)[None, :] // L
               == np.arange(B)[:, None]).astype(np.float32)               # (B, BL)
    g_cls = (np.arange(NL)[:, None] // L
             == np.arange(N)[None, :]).astype(np.float32)                 # (NL, N)
    return diag, g_batch, g_cls


# ---------------------------------------------------------------------------
# In-kernel building blocks (traced once inside the fused kernel body).
# ---------------------------------------------------------------------------
def _conv_relu_pool(x, w_stk, b_row, pool_sel, cin, L, mask_cache):
    """Conv1d(kernel=3, padding=1) + ReLU + MaxPool1d(2) for one layer.

    x:        (B*L, cin)      activations, row = b*L + l
    w_stk:    (3*cin, cout)   stacked taps, row = k*cin + ci (k=0 -> x[l-1])
    b_row:    (1, cout)
    pool_sel: (B*L//2, B*L)   host 0/1 constant picking rows 2j
    returns   (B*L//2, cout)
    """
    BL = x.shape[0]
    key = (BL, L)
    if key not in mask_cache:                     # shared across layers/branches
        lpos = lax.broadcasted_iota(jnp.int32, (BL, 1), 0) % L
        mask_cache[key] = ((lpos > 0).astype(jnp.float32),
                           (lpos < L - 1).astype(jnp.float32))
    m_prev, m_next = mask_cache[key]

    # +/-1 shifts on the XLU (sublane rotate); the lpos masks zero both the
    # conv zero-padding positions and any roll wraparound / batch-boundary
    # contamination (row = b*L + l, so l==0 / l==L-1 rows are exactly them).
    xp = pltpu.roll(x, shift=1, axis=0) * m_prev          # x[l-1], zero-padded
    xn = pltpu.roll(x, shift=BL - 1, axis=0) * m_next     # x[l+1], zero-padded

    if cin == 1:
        # K=1 contraction: VPU broadcast FMA instead of a rank-1 MXU dot.
        y = xp * w_stk[0:1, :] + x * w_stk[1:2, :] + xn * w_stk[2:3, :]
    else:
        # Collapse the 3 taps into one MXU push: (B*L, 3*cin) @ (3*cin, cout).
        x_stk = jnp.concatenate([xp, x, xn], axis=1)
        y = jnp.dot(x_stk, w_stk, preferred_element_type=jnp.float32)
    y = jnp.maximum(y + b_row, 0.0)                        # bias + ReLU

    # MaxPool1d(2): pair max via a sublane roll (wrap only touches the last,
    # odd, row which is never selected), then compact even rows with a single
    # host-precomputed 0/1 selection matmul.
    ymax = jnp.maximum(y, pltpu.roll(y, shift=BL - 1, axis=0))
    return jnp.dot(pool_sel, ymax, preferred_element_type=jnp.float32)


def _fc_branch(y, w_mix, diag, g_batch, g_cls):
    """One branch's contribution to the Linear head, with no in-kernel reshape.

    y:       (B*L, C)   final conv activations, row = b*L + l
    w_mix:   (C, N*L)   w_mix[c, n*L + l] = fc_w[n, c*L + l]
    diag:    (B*L, N*L) 0/1 host constant keeping columns with l' == row % L
    g_batch: (B, B*L)   0/1 host constant summing rows of batch b
    g_cls:   (N*L, N)   0/1 host constant summing the l-block of class n
    returns  (B, N):    out[b, n] = sum_{c,l} y[b*L+l, c] * fc_w[n, c*L+l]
    """
    t = jnp.dot(y, w_mix, preferred_element_type=jnp.float32) * diag
    u = jnp.dot(g_batch, t, preferred_element_type=jnp.float32)
    return jnp.dot(u, g_cls, preferred_element_type=jnp.float32)


def _make_fused_kernel(emg_cfg, imu_cfg):
    """emg_cfg / imu_cfg: tuple of (cin, L_in) per conv layer.

    Ref order: x_emg, x_imu,
               [w_stk, b_row, pool_sel] * emg_layers,
               [w_stk, b_row, pool_sel] * imu_layers,
               w_mix_e, diag_e, gb_e, gc_e,
               w_mix_i, diag_i, gb_i, gc_i,
               fc_b, out
    """
    n_e, n_i = len(emg_cfg), len(imu_cfg)

    def kernel(*refs):
        x_e_ref, x_i_ref = refs[0], refs[1]
        p = 2
        emg_refs = refs[p:p + 3 * n_e]
        p += 3 * n_e
        imu_refs = refs[p:p + 3 * n_i]
        p += 3 * n_i
        (wmix_e_ref, diag_e_ref, gb_e_ref, gc_e_ref,
         wmix_i_ref, diag_i_ref, gb_i_ref, gc_i_ref,
         bfc_ref, o_ref) = refs[p:p + 10]

        cache = {}   # shared boundary masks (e.g. EMG L2 and IMU L1)

        def run_branch(x, cfg, wrefs):
            for idx, (cin, L) in enumerate(cfg):
                x = _conv_relu_pool(
                    x, wrefs[3 * idx][...], wrefs[3 * idx + 1][...],
                    wrefs[3 * idx + 2][...], cin, L, cache)
            return x

        ye = run_branch(x_e_ref[...], emg_cfg, emg_refs)
        yi = run_branch(x_i_ref[...], imu_cfg, imu_refs)

        out = (_fc_branch(ye, wmix_e_ref[...], diag_e_ref[...],
                          gb_e_ref[...], gc_e_ref[...])
               + _fc_branch(yi, wmix_i_ref[...], diag_i_ref[...],
                            gb_i_ref[...], gc_i_ref[...])
               + bfc_ref[...])
        # TODO(synk): nn.Dropout is identity in eval mode and nn.Softmax is
        # defined but never applied in forward(), so neither appears here.
        o_ref[...] = out

    return kernel


# ---------------------------------------------------------------------------
# Parameter init (PyTorch-style uniform bounds) and one-time weight re-layout.
# ---------------------------------------------------------------------------
def init_params(key, input_shape_emg, input_shape_imu, num_classes,
                hidden_sizes_emg, hidden_sizes_imu):
    params = {"emg_convs": [], "imu_convs": []}
    emg_in, emg_len = 1, input_shape_emg[0] * input_shape_emg[1]
    for h in hidden_sizes_emg:
        key, k1, k2 = jax.random.split(key, 3)
        bound = 1.0 / float(emg_in * 3) ** 0.5
        params["emg_convs"].append((
            jax.random.uniform(k1, (h, emg_in, 3), jnp.float32, -bound, bound),
            jax.random.uniform(k2, (h,), jnp.float32, -bound, bound)))
        emg_in, emg_len = h, emg_len // 2
    imu_in, imu_len = 1, input_shape_imu
    for h in hidden_sizes_imu:
        key, k1, k2 = jax.random.split(key, 3)
        bound = 1.0 / float(imu_in * 3) ** 0.5
        params["imu_convs"].append((
            jax.random.uniform(k1, (h, imu_in, 3), jnp.float32, -bound, bound),
            jax.random.uniform(k2, (h,), jnp.float32, -bound, bound)))
        imu_in, imu_len = h, imu_len // 2
    fc_in = (emg_len + imu_len) * hidden_sizes_emg[-1]
    key, k1, k2 = jax.random.split(key, 3)
    bound = 1.0 / float(fc_in) ** 0.5
    params["fc_w"] = jax.random.uniform(k1, (num_classes, fc_in), jnp.float32,
                                        -bound, bound)
    params["fc_b"] = jax.random.uniform(k2, (num_classes,), jnp.float32,
                                        -bound, bound)
    return params


def prepare_params(params, input_shape_emg, input_shape_imu,
                   hidden_sizes_emg, hidden_sizes_imu, num_classes):
    """One-time weight re-layout, outside the hot path."""
    def conv_pack(w, b):
        cout, cin, _k = w.shape
        # (cout, cin, 3) -> (3*cin, cout), row = k*cin + ci, matching the
        # in-kernel [x_prev | x | x_next] column stacking.
        w_stk = jnp.transpose(w, (2, 1, 0)).reshape(3 * cin, cout)
        return w_stk, b.reshape(1, cout)

    prep = {
        "emg": [conv_pack(w, b) for w, b in params["emg_convs"]],
        "imu": [conv_pack(w, b) for w, b in params["imu_convs"]],
    }

    le = input_shape_emg[0] * input_shape_emg[1]
    for _ in hidden_sizes_emg:
        le //= 2
    li = input_shape_imu
    for _ in hidden_sizes_imu:
        li //= 2
    c_e, c_i, n = hidden_sizes_emg[-1], hidden_sizes_imu[-1], num_classes
    # NOTE: the PyTorch module sizes the FC with hidden_sizes_emg[-1] for both
    # branches, implicitly assuming the last hidden sizes match (latent bug in
    # the spec, satisfied by the demo config); we mirror that assumption.
    assert c_e == c_i, "module assumes equal last hidden sizes"
    fc_w = params["fc_w"]
    w_e = fc_w[:, : c_e * le].reshape(n, c_e, le)
    w_i = fc_w[:, c_e * le: c_e * le + c_i * li].reshape(n, c_i, li)
    # (N, C, L) -> (C, N*L): w_mix[c, n*L + l] = fc_w[n, c*L + l]
    prep["fc_e"] = jnp.transpose(w_e, (1, 0, 2)).reshape(c_e, n * le)
    prep["fc_i"] = jnp.transpose(w_i, (1, 0, 2)).reshape(c_i, n * li)
    prep["fc_b"] = params["fc_b"].reshape(1, n)
    return prep


# ---------------------------------------------------------------------------
# Forward: exactly one pallas_call per inference.
# ---------------------------------------------------------------------------
def forward(prep, emg, imu):
    B = emg.shape[0]
    le0 = math.prod(emg.shape[1:])      # emg.view(B, 1, -1) length
    li0 = math.prod(imu.shape[1:])
    x_e0 = emg.reshape(B * le0, 1).astype(jnp.float32)   # row = b*L + l
    x_i0 = imu.reshape(B * li0, 1).astype(jnp.float32)
    num_classes = prep["fc_b"].shape[1]

    def branch_inputs(layers, L0):
        cfg, ins, L = [], [], L0
        for w_stk, b_row in layers:
            assert L % 2 == 0, "MaxPool1d(2) path assumes even lengths"
            cfg.append((w_stk.shape[0] // 3, L))
            ins += [w_stk, b_row, _pool_select(B, L)]
            L //= 2
        return tuple(cfg), ins, L

    emg_cfg, emg_ins, le = branch_inputs(prep["emg"], le0)
    imu_cfg, imu_ins, li = branch_inputs(prep["imu"], li0)

    diag_e, gb_e, gc_e = _fc_masks(B, le, num_classes)
    diag_i, gb_i, gc_i = _fc_masks(B, li, num_classes)

    inputs = ([x_e0, x_i0] + emg_ins + imu_ins
              + [prep["fc_e"], diag_e, gb_e, gc_e,
                 prep["fc_i"], diag_i, gb_i, gc_i, prep["fc_b"]])

    kernel = _make_fused_kernel(emg_cfg, imu_cfg)
    # No grid: every operand is a whole-array, single-buffered VMEM resident,
    # so read-once weights are DMA'd exactly once and never double-buffered.
    return pl.pallas_call(
        kernel,
        out_shape=jax.ShapeDtypeStruct((B, num_classes), jnp.float32),
    )(*inputs)


# ---------------------------------------------------------------------------
# Pure-XLA reference (numerical cross-check against the fused kernel).
# ---------------------------------------------------------------------------
def reference_forward(params, emg, imu):
    B = emg.shape[0]

    def conv_stack(x, layers):                        # x: (B, 1, L)
        for w, b in layers:
            x = lax.conv_general_dilated(
                x, w, window_strides=(1,), padding=((1, 1),),
                dimension_numbers=("NCH", "OIH", "NCH"),
                precision=lax.Precision.HIGHEST)
            x = jnp.maximum(x + b[None, :, None], 0.0)
            bb, c, L = x.shape
            x = x.reshape(bb, c, L // 2, 2).max(axis=-1)   # MaxPool1d(2)
        return x

    xe = conv_stack(emg.reshape(B, 1, -1), params["emg_convs"])
    xi = conv_stack(imu.reshape(B, 1, -1), params["imu_convs"])
    feat = jnp.concatenate([xe.reshape(B, -1), xi.reshape(B, -1)], axis=1)
    return jnp.dot(feat, params["fc_w"].T,
                   precision=lax.Precision.HIGHEST) + params["fc_b"]


if __name__ == "__main__":
    # Shapes consistent with the module:
    #   emg_input_shape = (4, 16) -> flattened emg length 64
    #   imu_input_shape = 32, hidden sizes [8, 16], num_classes = 5, batch = 2
    input_shape_emg = (4, 16)
    input_shape_imu = 32
    num_classes = 5
    hidden_sizes_emg = [8, 16]
    hidden_sizes_imu = [8, 16]
    batch = 2

    key = jax.random.PRNGKey(0)
    kp, ke, ki = jax.random.split(key, 3)
    params = init_params(kp, input_shape_emg, input_shape_imu, num_classes,
                         hidden_sizes_emg, hidden_sizes_imu)
    emg = jax.random.normal(ke, (batch,) + input_shape_emg, jnp.float32)
    imu = jax.random.normal(ki, (batch, input_shape_imu), jnp.float32)

    prep = prepare_params(params, input_shape_emg, input_shape_imu,
                          hidden_sizes_emg, hidden_sizes_imu, num_classes)

    fwd = jax.jit(forward)
    out = jax.block_until_ready(fwd(prep, emg, imu))
    assert out.shape == (batch, num_classes) and out.dtype == jnp.float32

    # Numerical cross-check (tolerance tightened from 2e-2; all-f32 path).
    ref = jax.block_until_ready(reference_forward(params, emg, imu))
    assert jnp.allclose(out, ref, rtol=1e-3, atol=1e-4), (out, ref)
    print("KERNEL_OK")
</pallas_src>

<mosaic_0001>
module attributes {stable_mosaic.version = 11 : i64} {
  func.func @kernel(%arg0: memref<128x1xf32, #tpu.memory_space<vmem>>, %arg1: memref<64x1xf32, #tpu.memory_space<vmem>>, %arg2: memref<3x8xf32, #tpu.memory_space<vmem>>, %arg3: memref<1x8xf32, #tpu.memory_space<vmem>>, %arg4: memref<64x128xf32, #tpu.memory_space<vmem>>, %arg5: memref<24x16xf32, #tpu.memory_space<vmem>>, %arg6: memref<1x16xf32, #tpu.memory_space<vmem>>, %arg7: memref<32x64xf32, #tpu.memory_space<vmem>>, %arg8: memref<3x8xf32, #tpu.memory_space<vmem>>, %arg9: memref<1x8xf32, #tpu.memory_space<vmem>>, %arg10: memref<32x64xf32, #tpu.memory_space<vmem>>, %arg11: memref<24x16xf32, #tpu.memory_space<vmem>>, %arg12: memref<1x16xf32, #tpu.memory_space<vmem>>, %arg13: memref<16x32xf32, #tpu.memory_space<vmem>>, %arg14: memref<16x80xf32, #tpu.memory_space<vmem>>, %arg15: memref<32x80xf32, #tpu.memory_space<vmem>>, %arg16: memref<2x32xf32, #tpu.memory_space<vmem>>, %arg17: memref<80x5xf32, #tpu.memory_space<vmem>>, %arg18: memref<16x40xf32, #tpu.memory_space<vmem>>, %arg19: memref<16x40xf32, #tpu.memory_space<vmem>>, %arg20: memref<2x16xf32, #tpu.memory_space<vmem>>, %arg21: memref<40x5xf32, #tpu.memory_space<vmem>>, %arg22: memref<1x5xf32, #tpu.memory_space<vmem>>, %arg23: memref<2x5xf32, #tpu.memory_space<vmem>>) attributes {dimension_semantics = [], scalar_prefetch = 0 : i64, scratch_operands = 0 : i64, tpu.core_type = #tpu.core_type<tc>} {
    %c0 = arith.constant 0 : index
    %c0_0 = arith.constant 0 : index
    %0 = vector.load %arg0[%c0, %c0_0] : memref<128x1xf32, #tpu.memory_space<vmem>>, vector<128x1xf32>
    %c0_1 = arith.constant 0 : index
    %c0_2 = arith.constant 0 : index
    %1 = vector.load %arg2[%c0_1, %c0_2] : memref<3x8xf32, #tpu.memory_space<vmem>>, vector<3x8xf32>
    %c0_3 = arith.constant 0 : index
    %c0_4 = arith.constant 0 : index
    %2 = vector.load %arg3[%c0_3, %c0_4] : memref<1x8xf32, #tpu.memory_space<vmem>>, vector<1x8xf32>
    %c0_5 = arith.constant 0 : index
    %c0_6 = arith.constant 0 : index
    %3 = vector.load %arg4[%c0_5, %c0_6] : memref<64x128xf32, #tpu.memory_space<vmem>>, vector<64x128xf32>
    %4 = tpu.iota {dimensions = array<i32: 0>} : vector<128x1xi32>
    %c64_i32 = arith.constant 64 : i32
    %c0_i32 = arith.constant 0 : i32
    %5 = arith.cmpi eq, %c64_i32, %c0_i32 : i32
    %c1_i32 = arith.constant 1 : i32
    %6 = arith.select %5, %c1_i32, %c64_i32 : i32
    %7 = vector.broadcast %6 : i32 to vector<128x1xi32>
    %8 = arith.remsi %4, %7 : vector<128x1xi32>
    %c0_i32_7 = arith.constant 0 : i32
    %9 = vector.broadcast %c0_i32_7 : i32 to vector<128x1xi32>
    %10 = arith.cmpi ne, %8, %9 : vector<128x1xi32>
    %c0_i32_8 = arith.constant 0 : i32
    %11 = vector.broadcast %c0_i32_8 : i32 to vector<128x1xi32>
    %12 = arith.cmpi slt, %8, %11 : vector<128x1xi32>
    %c0_i32_9 = arith.constant 0 : i32
    %13 = arith.cmpi slt, %6, %c0_i32_9 : i32
    %14 = vector.broadcast %13 : i1 to vector<128x1xi1>
    %15 = vector.broadcast %14 : vector<128x1xi1> to vector<128x1xi1>
    %16 = arith.xori %12, %15 : vector<128x1xi1>
    %17 = arith.andi %16, %10 : vector<128x1xi1>
    %18 = vector.broadcast %6 : i32 to vector<128x1xi32>
    %19 = arith.addi %8, %18 : vector<128x1xi32>
    %20 = arith.select %17, %19, %8 : vector<128x1xi1>, vector<128x1xi32>
    %c0_i32_10 = arith.constant 0 : i32
    %21 = vector.broadcast %c0_i32_10 : i32 to vector<128x1xi32>
    %22 = arith.cmpi sgt, %20, %21 : vector<128x1xi32>
    %23 = arith.extui %22 : vector<128x1xi1> to vector<128x1xi32>
    %24 = arith.sitofp %23 : vector<128x1xi32> to vector<128x1xf32>
    %c63_i32 = arith.constant 63 : i32
    %25 = vector.broadcast %c63_i32 : i32 to vector<128x1xi32>
    %26 = arith.cmpi slt, %20, %25 : vector<128x1xi32>
    %27 = arith.extui %26 : vector<128x1xi1> to vector<128x1xi32>
    %28 = arith.sitofp %27 : vector<128x1xi32> to vector<128x1xf32>
    %c1_i32_11 = arith.constant 1 : i32
    %29 = tpu.dynamic_rotate %0 by %c1_i32_11 dim 0 : vector<128x1xf32>, i32 -> vector<128x1xf32>
    %30 = arith.mulf %29, %24 : vector<128x1xf32>
    %c127_i32 = arith.constant 127 : i32
    %31 = tpu.dynamic_rotate %0 by %c127_i32 dim 0 : vector<128x1xf32>, i32 -> vector<128x1xf32>
    %32 = arith.mulf %31, %28 : vector<128x1xf32>
    %33 = vector.extract_strided_slice %1 {offsets = [0, 0], sizes = [1, 8], strides = [1, 1]} : vector<3x8xf32> to vector<1x8xf32>
    %34 = vector.broadcast %30 : vector<128x1xf32> to vector<128x8xf32>
    %35 = vector.broadcast %33 : vector<1x8xf32> to vector<128x8xf32>
    %36 = arith.mulf %34, %35 : vector<128x8xf32>
    %37 = vector.extract_strided_slice %1 {offsets = [1, 0], sizes = [1, 8], strides = [1, 1]} : vector<3x8xf32> to vector<1x8xf32>
    %38 = vector.broadcast %0 : vector<128x1xf32> to vector<128x8xf32>
    %39 = vector.broadcast %37 : vector<1x8xf32> to vector<128x8xf32>
    %40 = arith.mulf %38, %39 : vector<128x8xf32>
    %41 = arith.addf %36, %40 : vector<128x8xf32>
    %42 = vector.extract_strided_slice %1 {offsets = [2, 0], sizes = [1, 8], strides = [1, 1]} : vector<3x8xf32> to vector<1x8xf32>
    %43 = vector.broadcast %32 : vector<128x1xf32> to vector<128x8xf32>
    %44 = vector.broadcast %42 : vector<1x8xf32> to vector<128x8xf32>
    %45 = arith.mulf %43, %44 : vector<128x8xf32>
    %46 = arith.addf %41, %45 : vector<128x8xf32>
    %47 = vector.broadcast %2 : vector<1x8xf32> to vector<128x8xf32>
    %48 = arith.addf %46, %47 : vector<128x8xf32>
    %cst = arith.constant 0.000000e+00 : f32
    %49 = vector.broadcast %cst : f32 to vector<128x8xf32>
    %50 = arith.maximumf %48, %49 : vector<128x8xf32>
    %c127_i32_12 = arith.constant 127 : i32
    %51 = tpu.dynamic_rotate %50 by %c127_i32_12 dim 0 : vector<128x8xf32>, i32 -> vector<128x8xf32>
    %52 = arith.maximumf %50, %51 : vector<128x8xf32>
    %cst_13 = arith.constant dense<0.000000e+00> : vector<64x8xf32>
    %53 = tpu.matmul %3, %52, %cst_13 {dimension_numbers = #tpu.dot_dimension_numbers<[1], [0], [0], [1], [0, 0, 1, 1], [], []>} : vector<64x128xf32>, vector<128x8xf32>, vector<64x8xf32> -> vector<64x8xf32>
    %c0_14 = arith.constant 0 : index
    %c0_15 = arith.constant 0 : index
    %54 = vector.load %arg5[%c0_14, %c0_15] : memref<24x16xf32, #tpu.memory_space<vmem>>, vector<24x16xf32>
    %c0_16 = arith.constant 0 : index
    %c0_17 = arith.constant 0 : index
    %55 = vector.load %arg6[%c0_16, %c0_17] : memref<1x16xf32, #tpu.memory_space<vmem>>, vector<1x16xf32>
    %c0_18 = arith.constant 0 : index
    %c0_19 = arith.constant 0 : index
    %56 = vector.load %arg7[%c0_18, %c0_19] : memref<32x64xf32, #tpu.memory_space<vmem>>, vector<32x64xf32>
    %57 = tpu.iota {dimensions = array<i32: 0>} : vector<64x1xi32>
    %c32_i32 = arith.constant 32 : i32
    %c0_i32_20 = arith.constant 0 : i32
    %58 = arith.cmpi eq, %c32_i32, %c0_i32_20 : i32
    %c1_i32_21 = arith.constant 1 : i32
    %59 = arith.select %58, %c1_i32_21, %c32_i32 : i32
    %60 = vector.broadcast %59 : i32 to vector<64x1xi32>
    %61 = arith.remsi %57, %60 : vector<64x1xi32>
    %c0_i32_22 = arith.constant 0 : i32
    %62 = vector.broadcast %c0_i32_22 : i32 to vector<64x1xi32>
    %63 = arith.cmpi ne, %61, %62 : vector<64x1xi32>
    %c0_i32_23 = arith.constant 0 : i32
    %64 = vector.broadcast %c0_i32_23 : i32 to vector<64x1xi32>
    %65 = arith.cmpi slt, %61, %64 : vector<64x1xi32>
    %c0_i32_24 = arith.constant 0 : i32
    %66 = arith.cmpi slt, %59, %c0_i32_24 : i32
    %67 = vector.broadcast %66 : i1 to vector<64x1xi1>
    %68 = vector.broadcast %67 : vector<64x1xi1> to vector<64x1xi1>
    %69 = arith.xori %65, %68 : vector<64x1xi1>
    %70 = arith.andi %69, %63 : vector<64x1xi1>
    %71 = vector.broadcast %59 : i32 to vector<64x1xi32>
    %72 = arith.addi %61, %71 : vector<64x1xi32>
    %73 = arith.select %70, %72, %61 : vector<64x1xi1>, vector<64x1xi32>
    %c0_i32_25 = arith.constant 0 : i32
    %74 = vector.broadcast %c0_i32_25 : i32 to vector<64x1xi32>
    %75 = arith.cmpi sgt, %73, %74 : vector<64x1xi32>
    %76 = arith.extui %75 : vector<64x1xi1> to vector<64x1xi32>
    %77 = arith.sitofp %76 : vector<64x1xi32> to vector<64x1xf32>
    %c31_i32 = arith.constant 31 : i32
    %78 = vector.broadcast %c31_i32 : i32 to vector<64x1xi32>
    %79 = arith.cmpi slt, %73, %78 : vector<64x1xi32>
    %80 = arith.extui %79 : vector<64x1xi1> to vector<64x1xi32>
    %81 = arith.sitofp %80 : vector<64x1xi32> to vector<64x1xf32>
    %c1_i32_26 = arith.constant 1 : i32
    %82 = tpu.dynamic_rotate %53 by %c1_i32_26 dim 0 : vector<64x8xf32>, i32 -> vector<64x8xf32>
    %83 = vector.broadcast %77 : vector<64x1xf32> to vector<64x8xf32>
    %84 = arith.mulf %82, %83 : vector<64x8xf32>
    %c63_i32_27 = arith.constant 63 : i32
    %85 = tpu.dynamic_rotate %53 by %c63_i32_27 dim 0 : vector<64x8xf32>, i32 -> vector<64x8xf32>
    %86 = vector.broadcast %81 : vector<64x1xf32> to vector<64x8xf32>
    %87 = arith.mulf %85, %86 : vector<64x8xf32>
    %88 = tpu.concatenate %84, %53, %87 in 1 : vector<64x8xf32>, vector<64x8xf32>, vector<64x8xf32> -> vector<64x24xf32>
    %cst_28 = arith.constant dense<0.000000e+00> : vector<64x16xf32>
    %89 = tpu.matmul %88, %54, %cst_28 {dimension_numbers = #tpu.dot_dimension_numbers<[1], [0], [0], [1], [0, 0, 1, 1], [], []>} : vector<64x24xf32>, vector<24x16xf32>, vector<64x16xf32> -> vector<64x16xf32>
    %90 = vector.broadcast %55 : vector<1x16xf32> to vector<64x16xf32>
    %91 = arith.addf %89, %90 : vector<64x16xf32>
    %cst_29 = arith.constant 0.000000e+00 : f32
    %92 = vector.broadcast %cst_29 : f32 to vector<64x16xf32>
    %93 = arith.maximumf %91, %92 : vector<64x16xf32>
    %c63_i32_30 = arith.constant 63 : i32
    %94 = tpu.dynamic_rotate %93 by %c63_i32_30 dim 0 : vector<64x16xf32>, i32 -> vector<64x16xf32>
    %95 = arith.maximumf %93, %94 : vector<64x16xf32>
    %cst_31 = arith.constant dense<0.000000e+00> : vector<32x16xf32>
    %96 = tpu.matmul %56, %95, %cst_31 {dimension_numbers = #tpu.dot_dimension_numbers<[1], [0], [0], [1], [0, 0, 1, 1], [], []>} : vector<32x64xf32>, vector<64x16xf32>, vector<32x16xf32> -> vector<32x16xf32>
    %c0_32 = arith.constant 0 : index
    %c0_33 = arith.constant 0 : index
    %97 = vector.load %arg1[%c0_32, %c0_33] : memref<64x1xf32, #tpu.memory_space<vmem>>, vector<64x1xf32>
    %c0_34 = arith.constant 0 : index
    %c0_35 = arith.constant 0 : index
    %98 = vector.load %arg8[%c0_34, %c0_35] : memref<3x8xf32, #tpu.memory_space<vmem>>, vector<3x8xf32>
    %c0_36 = arith.constant 0 : index
    %c0_37 = arith.constant 0 : index
    %99 = vector.load %arg9[%c0_36, %c0_37] : memref<1x8xf32, #tpu.memory_space<vmem>>, vector<1x8xf32>
    %c0_38 = arith.constant 0 : index
    %c0_39 = arith.constant 0 : index
    %100 = vector.load %arg10[%c0_38, %c0_39] : memref<32x64xf32, #tpu.memory_space<vmem>>, vector<32x64xf32>
    %c1_i32_40 = arith.constant 1 : i32
    %101 = tpu.dynamic_rotate %97 by %c1_i32_40 dim 0 : vector<64x1xf32>, i32 -> vector<64x1xf32>
    %102 = arith.mulf %101, %77 : vector<64x1xf32>
    %c63_i32_41 = arith.constant 63 : i32
    %103 = tpu.dynamic_rotate %97 by %c63_i32_41 dim 0 : vector<64x1xf32>, i32 -> vector<64x1xf32>
    %104 = arith.mulf %103, %81 : vector<64x1xf32>
    %105 = vector.extract_strided_slice %98 {offsets = [0, 0], sizes = [1, 8], strides = [1, 1]} : vector<3x8xf32> to vector<1x8xf32>
    %106 = vector.broadcast %102 : vector<64x1xf32> to vector<64x8xf32>
    %107 = vector.broadcast %105 : vector<1x8xf32> to vector<64x8xf32>
    %108 = arith.mulf %106, %107 : vector<64x8xf32>
    %109 = vector.extract_strided_slice %98 {offsets = [1, 0], sizes = [1, 8], strides = [1, 1]} : vector<3x8xf32> to vector<1x8xf32>
    %110 = vector.broadcast %97 : vector<64x1xf32> to vector<64x8xf32>
    %111 = vector.broadcast %109 : vector<1x8xf32> to vector<64x8xf32>
    %112 = arith.mulf %110, %111 : vector<64x8xf32>
    %113 = arith.addf %108, %112 : vector<64x8xf32>
    %114 = vector.extract_strided_slice %98 {offsets = [2, 0], sizes = [1, 8], strides = [1, 1]} : vector<3x8xf32> to vector<1x8xf32>
    %115 = vector.broadcast %104 : vector<64x1xf32> to vector<64x8xf32>
    %116 = vector.broadcast %114 : vector<1x8xf32> to vector<64x8xf32>
    %117 = arith.mulf %115, %116 : vector<64x8xf32>
    %118 = arith.addf %113, %117 : vector<64x8xf32>
    %119 = vector.broadcast %99 : vector<1x8xf32> to vector<64x8xf32>
    %120 = arith.addf %118, %119 : vector<64x8xf32>
    %cst_42 = arith.constant 0.000000e+00 : f32
    %121 = vector.broadcast %cst_42 : f32 to vector<64x8xf32>
    %122 = arith.maximumf %120, %121 : vector<64x8xf32>
    %c63_i32_43 = arith.constant 63 : i32
    %123 = tpu.dynamic_rotate %122 by %c63_i32_43 dim 0 : vector<64x8xf32>, i32 -> vector<64x8xf32>
    %124 = arith.maximumf %122, %123 : vector<64x8xf32>
    %cst_44 = arith.constant dense<0.000000e+00> : vector<32x8xf32>
    %125 = tpu.matmul %100, %124, %cst_44 {dimension_numbers = #tpu.dot_dimension_numbers<[1], [0], [0], [1], [0, 0, 1, 1], [], []>} : vector<32x64xf32>, vector<64x8xf32>, vector<32x8xf32> -> vector<32x8xf32>
    %c0_45 = arith.constant 0 : index
    %c0_46 = arith.constant 0 : index
    %126 = vector.load %arg11[%c0_45, %c0_46] : memref<24x16xf32, #tpu.memory_space<vmem>>, vector<24x16xf32>
    %c0_47 = arith.constant 0 : index
    %c0_48 = arith.constant 0 : index
    %127 = vector.load %arg12[%c0_47, %c0_48] : memref<1x16xf32, #tpu.memory_space<vmem>>, vector<1x16xf32>
    %c0_49 = arith.constant 0 : index
    %c0_50 = arith.constant 0 : index
    %128 = vector.load %arg13[%c0_49, %c0_50] : memref<16x32xf32, #tpu.memory_space<vmem>>, vector<16x32xf32>
    %129 = tpu.iota {dimensions = array<i32: 0>} : vector<32x1xi32>
    %c16_i32 = arith.constant 16 : i32
    %c0_i32_51 = arith.constant 0 : i32
    %130 = arith.cmpi eq, %c16_i32, %c0_i32_51 : i32
    %c1_i32_52 = arith.constant 1 : i32
    %131 = arith.select %130, %c1_i32_52, %c16_i32 : i32
    %132 = vector.broadcast %131 : i32 to vector<32x1xi32>
    %133 = arith.remsi %129, %132 : vector<32x1xi32>
    %c0_i32_53 = arith.constant 0 : i32
    %134 = vector.broadcast %c0_i32_53 : i32 to vector<32x1xi32>
    %135 = arith.cmpi ne, %133, %134 : vector<32x1xi32>
    %c0_i32_54 = arith.constant 0 : i32
    %136 = vector.broadcast %c0_i32_54 : i32 to vector<32x1xi32>
    %137 = arith.cmpi slt, %133, %136 : vector<32x1xi32>
    %c0_i32_55 = arith.constant 0 : i32
    %138 = arith.cmpi slt, %131, %c0_i32_55 : i32
    %139 = vector.broadcast %138 : i1 to vector<32x1xi1>
    %140 = vector.broadcast %139 : vector<32x1xi1> to vector<32x1xi1>
    %141 = arith.xori %137, %140 : vector<32x1xi1>
    %142 = arith.andi %141, %135 : vector<32x1xi1>
    %143 = vector.broadcast %131 : i32 to vector<32x1xi32>
    %144 = arith.addi %133, %143 : vector<32x1xi32>
    %145 = arith.select %142, %144, %133 : vector<32x1xi1>, vector<32x1xi32>
    %c0_i32_56 = arith.constant 0 : i32
    %146 = vector.broadcast %c0_i32_56 : i32 to vector<32x1xi32>
    %147 = arith.cmpi sgt, %145, %146 : vector<32x1xi32>
    %148 = arith.extui %147 : vector<32x1xi1> to vector<32x1xi32>
    %149 = arith.sitofp %148 : vector<32x1xi32> to vector<32x1xf32>
    %c15_i32 = arith.constant 15 : i32
    %150 = vector.broadcast %c15_i32 : i32 to vector<32x1xi32>
    %151 = arith.cmpi slt, %145, %150 : vector<32x1xi32>
    %152 = arith.extui %151 : vector<32x1xi1> to vector<32x1xi32>
    %153 = arith.sitofp %152 : vector<32x1xi32> to vector<32x1xf32>
    %c1_i32_57 = arith.constant 1 : i32
    %154 = tpu.dynamic_rotate %125 by %c1_i32_57 dim 0 : vector<32x8xf32>, i32 -> vector<32x8xf32>
    %155 = vector.broadcast %149 : vector<32x1xf32> to vector<32x8xf32>
    %156 = arith.mulf %154, %155 : vector<32x8xf32>
    %c31_i32_58 = arith.constant 31 : i32
    %157 = tpu.dynamic_rotate %125 by %c31_i32_58 dim 0 : vector<32x8xf32>, i32 -> vector<32x8xf32>
    %158 = vector.broadcast %153 : vector<32x1xf32> to vector<32x8xf32>
    %159 = arith.mulf %157, %158 : vector<32x8xf32>
    %160 = tpu.concatenate %156, %125, %159 in 1 : vector<32x8xf32>, vector<32x8xf32>, vector<32x8xf32> -> vector<32x24xf32>
    %cst_59 = arith.constant dense<0.000000e+00> : vector<32x16xf32>
    %161 = tpu.matmul %160, %126, %cst_59 {dimension_numbers = #tpu.dot_dimension_numbers<[1], [0], [0], [1], [0, 0, 1, 1], [], []>} : vector<32x24xf32>, vector<24x16xf32>, vector<32x16xf32> -> vector<32x16xf32>
    %162 = vector.broadcast %127 : vector<1x16xf32> to vector<32x16xf32>
    %163 = arith.addf %161, %162 : vector<32x16xf32>
    %cst_60 = arith.constant 0.000000e+00 : f32
    %164 = vector.broadcast %cst_60 : f32 to vector<32x16xf32>
    %165 = arith.maximumf %163, %164 : vector<32x16xf32>
    %c31_i32_61 = arith.constant 31 : i32
    %166 = tpu.dynamic_rotate %165 by %c31_i32_61 dim 0 : vector<32x16xf32>, i32 -> vector<32x16xf32>
    %167 = arith.maximumf %165, %166 : vector<32x16xf32>
    %cst_62 = arith.constant dense<0.000000e+00> : vector<16x16xf32>
    %168 = tpu.matmul %128, %167, %cst_62 {dimension_numbers = #tpu.dot_dimension_numbers<[1], [0], [0], [1], [0, 0, 1, 1], [], []>} : vector<16x32xf32>, vector<32x16xf32>, vector<16x16xf32> -> vector<16x16xf32>
    %c0_63 = arith.constant 0 : index
    %c0_64 = arith.constant 0 : index
    %169 = vector.load %arg14[%c0_63, %c0_64] : memref<16x80xf32, #tpu.memory_space<vmem>>, vector<16x80xf32>
    %c0_65 = arith.constant 0 : index
    %c0_66 = arith.constant 0 : index
    %170 = vector.load %arg15[%c0_65, %c0_66] : memref<32x80xf32, #tpu.memory_space<vmem>>, vector<32x80xf32>
    %c0_67 = arith.constant 0 : index
    %c0_68 = arith.constant 0 : index
    %171 = vector.load %arg16[%c0_67, %c0_68] : memref<2x32xf32, #tpu.memory_space<vmem>>, vector<2x32xf32>
    %c0_69 = arith.constant 0 : index
    %c0_70 = arith.constant 0 : index
    %172 = vector.load %arg17[%c0_69, %c0_70] : memref<80x5xf32, #tpu.memory_space<vmem>>, vector<80x5xf32>
    %cst_71 = arith.constant dense<0.000000e+00> : vector<32x80xf32>
    %173 = tpu.matmul %96, %169, %cst_71 {dimension_numbers = #tpu.dot_dimension_numbers<[1], [0], [0], [1], [0, 0, 1, 1], [], []>} : vector<32x16xf32>, vector<16x80xf32>, vector<32x80xf32> -> vector<32x80xf32>
    %174 = arith.mulf %173, %170 : vector<32x80xf32>
    %cst_72 = arith.constant dense<0.000000e+00> : vector<2x80xf32>
    %175 = tpu.matmul %171, %174, %cst_72 {dimension_numbers = #tpu.dot_dimension_numbers<[1], [0], [0], [1], [0, 0, 1, 1], [], []>} : vector<2x32xf32>, vector<32x80xf32>, vector<2x80xf32> -> vector<2x80xf32>
    %cst_73 = arith.constant dense<0.000000e+00> : vector<2x5xf32>
    %176 = tpu.matmul %175, %172, %cst_73 {dimension_numbers = #tpu.dot_dimension_numbers<[1], [0], [0], [1], [0, 0, 1, 1], [], []>} : vector<2x80xf32>, vector<80x5xf32>, vector<2x5xf32> -> vector<2x5xf32>
    %c0_74 = arith.constant 0 : index
    %c0_75 = arith.constant 0 : index
    %177 = vector.load %arg18[%c0_74, %c0_75] : memref<16x40xf32, #tpu.memory_space<vmem>>, vector<16x40xf32>
    %c0_76 = arith.constant 0 : index
    %c0_77 = arith.constant 0 : index
    %178 = vector.load %arg19[%c0_76, %c0_77] : memref<16x40xf32, #tpu.memory_space<vmem>>, vector<16x40xf32>
    %c0_78 = arith.constant 0 : index
    %c0_79 = arith.constant 0 : index
    %179 = vector.load %arg20[%c0_78, %c0_79] : memref<2x16xf32, #tpu.memory_space<vmem>>, vector<2x16xf32>
    %c0_80 = arith.constant 0 : index
    %c0_81 = arith.constant 0 : index
    %180 = vector.load %arg21[%c0_80, %c0_81] : memref<40x5xf32, #tpu.memory_space<vmem>>, vector<40x5xf32>
    %cst_82 = arith.constant dense<0.000000e+00> : vector<16x40xf32>
    %181 = tpu.matmul %168, %177, %cst_82 {dimension_numbers = #tpu.dot_dimension_numbers<[1], [0], [0], [1], [0, 0, 1, 1], [], []>} : vector<16x16xf32>, vector<16x40xf32>, vector<16x40xf32> -> vector<16x40xf32>
    %182 = arith.mulf %181, %178 : vector<16x40xf32>
    %cst_83 = arith.constant dense<0.000000e+00> : vector<2x40xf32>
    %183 = tpu.matmul %179, %182, %cst_83 {dimension_numbers = #tpu.dot_dimension_numbers<[1], [0], [0], [1], [0, 0, 1, 1], [], []>} : vector<2x16xf32>, vector<16x40xf32>, vector<2x40xf32> -> vector<2x40xf32>
    %cst_84 = arith.constant dense<0.000000e+00> : vector<2x5xf32>
    %184 = tpu.matmul %183, %180, %cst_84 {dimension_numbers = #tpu.dot_dimension_numbers<[1], [0], [0], [1], [0, 0, 1, 1], [], []>} : vector<2x40xf32>, vector<40x5xf32>, vector<2x5xf32> -> vector<2x5xf32>
    %185 = arith.addf %176, %184 : vector<2x5xf32>
    %c0_85 = arith.constant 0 : index
    %c0_86 = arith.constant 0 : index
    %186 = vector.load %arg22[%c0_85, %c0_86] : memref<1x5xf32, #tpu.memory_space<vmem>>, vector<1x5xf32>
    %187 = vector.broadcast %186 : vector<1x5xf32> to vector<2x5xf32>
    %188 = arith.addf %185, %187 : vector<2x5xf32>
    %c0_87 = arith.constant 0 : index
    %c0_88 = arith.constant 0 : index
    %189 = vector.load %arg23[%c0_87, %c0_88] : memref<2x5xf32, #tpu.memory_space<vmem>>, vector<2x5xf32>
    tpu.vector_store %arg23[%c0_87, %c0_88], %188 {strides = array<i32>} : memref<2x5xf32, #tpu.memory_space<vmem>>, vector<2x5xf32>,
    return
  }
}

</mosaic_0001>

<bundles_post_ra>
// kernel: forward.1
= control target key start
LH: loop header
LB: loop body
LE: loop exit
PB: predicated region body
PF: predicated region fallthrough
CT: control target
= control target key end

     0   :  { %s4598_s0 = inlined_call_operand.vmem [shape: f32[128,1], index: 0, kind: input, shape index: {}]   ;;  %s4599_s1 = inlined_call_operand.vmem [shape: f32[64,1], index: 1, kind: input, shape index: {}]   ;;  %s4600_s2 = inlined_call_operand.hbm [shape: f32[3,8], index: 2, kind: input, shape index: {}]   ;;  %s4601_s3 = inlined_call_operand.hbm [shape: f32[1,8], index: 3, kind: input, shape index: {}]   ;;  %s4602_s4 = inlined_call_operand.vmem [shape: f32[64,128], index: 4, kind: input, shape index: {}]   ;;  %s4603_s5 = inlined_call_operand.vmem [shape: f32[24,16], index: 5, kind: input, shape index: {}]   ;;  %s4604_s6 = inlined_call_operand.hbm [shape: f32[1,16], index: 6, kind: input, shape index: {}]   ;;  %s4605_s7 = inlined_call_operand.vmem [shape: f32[32,64], index: 7, kind: input, shape index: {}, may-alias: {7,10}]   ;;  %s4606_s8 = inlined_call_operand.hbm [shape: f32[3,8], index: 8, kind: input, shape index: {}]   ;;  %s4607_s9 = inlined_call_operand.hbm [shape: f32[1,8], index: 9, kind: input, shape index: {}]   ;;  %s4608_s10 = inlined_call_operand.vmem [shape: f32[32,64], index: 10, kind: input, shape index: {}, may-alias: {7,10}]   ;;  %s4609_s11 = inlined_call_operand.vmem [shape: f32[24,16], index: 11, kind: input, shape index: {}]   ;;  %s4610_s12 = inlined_call_operand.vmem [shape: f32[1,16], index: 12, kind: input, shape index: {}]   ;;  %s4611_s13 = inlined_call_operand.vmem [shape: f32[16,32], index: 13, kind: input, shape index: {}]   ;;  %s4612_s14 = inlined_call_operand.vmem [shape: f32[16,80], index: 14, kind: input, shape index: {}]   ;;  %s4613_s15 = inlined_call_operand.vmem [shape: f32[32,80], index: 15, kind: input, shape index: {}]   ;;  %s4614_s16 = inlined_call_operand.vmem [shape: f32[2,32], index: 16, kind: input, shape index: {}]   ;;  %s4615_s17 = inlined_call_operand.vmem [shape: f32[80,5], index: 17, kind: input, shape index: {}]   ;;  %s4616_s18 = inlined_call_operand.vmem [shape: f32[16,40], index: 18, kind: input, shape index: {}]   ;;  %s4617_s19 = inlined_call_operand.vmem [shape: f32[16,40], index: 19, kind: input, shape index: {}]   ;;  %s4618_s20 = inlined_call_operand.vmem [shape: f32[2,16], index: 20, kind: input, shape index: {}]   ;;  %s4619_s21 = inlined_call_operand.vmem [shape: f32[40,5], index: 21, kind: input, shape index: {}]   ;;  %s4620_s22 = inlined_call_operand.hbm [shape: f32[1,5], index: 22, kind: input, shape index: {}]   ;;  %s4621_s23 = inlined_call_operand.hbm [shape: f32[2,5], index: 23, kind: output, shape index: {}]  }
   0x1   :  { %4630 = sst [smem:[#allocation19_spill]] %s4598_s0 }
   0x2   :  { %4631 = sst [smem:[#allocation20_spill]] %s4599_s1 }
   0x3   :  { %4632 = sst [smem:[#allocation21_spill]] %s4600_s2 }
   0x4   :  { %4633 = sst [smem:[#allocation22_spill]] %s4601_s3 }
   0x5   :  { %4634 = sst [smem:[#allocation23_spill]] %s4602_s4 }
   0x6   :  { %4635 = sst [smem:[#allocation24_spill]] %s4603_s5 }
   0x7   :  { %4636 = sst [smem:[#allocation25_spill]] %s4604_s6 }
   0x8   :  { %4637 = sst [smem:[#allocation26_spill]] %s4605_s7 }
   0x9   :  { %28 = vsyncpa [#allocation3], 0 }
   0xa   :  { %29 = vsyncpa [#allocation6], 0 }
   0xb   :  { %30 = vsyncpa [#allocation9], 0 }
   0xc   :  { %31 = vsyncpa [#allocation12], 0 }
   0xd   :  { %32 = vsyncpa [#allocation4], 0  ;;  %s3551_s4 = smov [#allocation5]   ;;  %s3552_s24 = smov [#allocation8]  }
   0xe   :  { %s53_s30 = sshll.u32 %s3551_s4, 4  ;;  %s79_s25 = sshll.u32 %s3552_s24, 4  ;;  %s54_s30 = int_to_ptr.vmem [resolvable:$true] %s53_s30  ;;  %s80_s25 = int_to_ptr.vmem [resolvable:$true] %s79_s25 }
   0xf   :  { %s4638_s26 = sld [smem:[#allocation22_spill]] }
  0x15   :  { %s3387_s2 = scalar_lea.hbm %s4638_s26, 16 }
  0x16   :  { %p3388_p0 = scmp.ne.s32.totalorder %s4638_s26, %s3387_s2  ;;  %p3391_p1 = scmp.lt.u32.totalorder %s3387_s2, %s4638_s26 }
  0x18   :  { %p3393_p2 = pnand %p3391_p1, %p3388_p0 }
  0x1a   :  { %3396 = shalt.err (!%p3393_p2)
}
  0x1b   :  { %s3397_s29 = scalar_lea.vmem %s54_s30, 16  ;;  %s3401_s3 = scalar_lea.vmem %s54_s30, 32 }
  0x1c   :  { %p3398_p3 = scmp.ne.s32.totalorder %s54_s30, %s3397_s29  ;;  %p3402_p4 = scmp.lt.s32.totalorder %s54_s30, %s54_s30 }
  0x1d   :  { %p3403_p5 = scmp.lt.s32.totalorder %s3401_s3, %s3397_s29 }
  0x1f   :  { %p3404_p6 = por %p3403_p5, %p3402_p4 }
  0x21   :  { %p3405_p7 = pnand %p3404_p6, %p3398_p3 }
  0x23   :  { %3408 = shalt.err (!%p3405_p7)
}
  0x24   :  { %56 = dma.hbm_to_vmem [thread:$0]  %s4638_s26, 16, %s54_s30, [#allocation6]  }
  0x25   :  { %s3409_s1 = scalar_lea.hbm %s4606_s8, 64 }
  0x26   :  { %p3410_p8 = scmp.ne.s32.totalorder %s4606_s8, %s3409_s1  ;;  %p3413_p9 = scmp.lt.u32.totalorder %s3409_s1, %s4606_s8 }
  0x28   :  { %p3415_p10 = pnand %p3413_p9, %p3410_p8 }
  0x2a   :  { %3418 = shalt.err (!%p3415_p10)
}
  0x2b   :  { %s3419_s28 = scalar_lea.vmem %s80_s25, 64  ;;  %p3424_p12 = scmp.lt.s32.totalorder %s80_s25, %s80_s25 }
  0x2c   :  { %p3420_p11 = scmp.ne.s32.totalorder %s80_s25, %s3419_s28  ;;  %p3425_p13 = scmp.lt.s32.totalorder %s3419_s28, %s3419_s28 }
  0x2e   :  { %p3426_p0 = por %p3425_p13, %p3424_p12 }
  0x30   :  { %p3427_p1 = pnand %p3426_p0, %p3420_p11 }
  0x32   :  { %3430 = shalt.err (!%p3427_p1)
}
  0x33   :  { %82 = dma.hbm_to_vmem [thread:$0]  %s4606_s8, 64, %s80_s25, [#allocation9]  }
  0x34   :  { %s3553_s29 = smov [#allocation2]   ;;  %s3554_s0 = smov [#allocation7]  }
  0x35   :  { %s43_s3 = sshll.u32 %s3553_s29, 4  ;;  %s67_s4 = sshll.u32 %s3554_s0, 4  ;;  %s44_s3 = int_to_ptr.vmem [resolvable:$true] %s43_s3  ;;  %s68_s4 = int_to_ptr.vmem [resolvable:$true] %s67_s4 }
  0x36   :  { %s4639_s1 = sld [smem:[#allocation21_spill]] }
  0x3c   :  { %s3431_s6 = scalar_lea.hbm %s4639_s1, 64 }
  0x3d   :  { %p3432_p2 = scmp.ne.s32.totalorder %s4639_s1, %s3431_s6  ;;  %p3435_p3 = scmp.lt.u32.totalorder %s3431_s6, %s4639_s1 }
  0x3f   :  { %p3437_p4 = pnand %p3435_p3, %p3432_p2 }
  0x41   :  { %3440 = shalt.err (!%p3437_p4)
}
  0x42   :  { %s3441_s8 = scalar_lea.vmem %s44_s3, 64  ;;  %p3446_p6 = scmp.lt.s32.totalorder %s44_s3, %s44_s3 }
  0x43   :  { %p3442_p5 = scmp.ne.s32.totalorder %s44_s3, %s3441_s8  ;;  %p3447_p7 = scmp.lt.s32.totalorder %s3441_s8, %s3441_s8 }
  0x45   :  { %p3448_p8 = por %p3447_p7, %p3446_p6 }
  0x47   :  { %p3449_p9 = pnand %p3448_p8, %p3442_p5 }
  0x49   :  { %3452 = shalt.err (!%p3449_p9)
}
  0x4a   :  { %46 = dma.hbm_to_vmem [thread:$0]  %s4639_s1, 64, %s44_s3, [#allocation3]  }
  0x4b   :  { %s4640_s0 = sld [smem:[#allocation25_spill]] }
  0x51   :  { %s3453_s24 = scalar_lea.hbm %s4640_s0, 16 }
  0x52   :  { %p3454_p10 = scmp.ne.s32.totalorder %s4640_s0, %s3453_s24  ;;  %p3457_p11 = scmp.lt.u32.totalorder %s3453_s24, %s4640_s0 }
  0x54   :  { %p3459_p12 = pnand %p3457_p11, %p3454_p10 }
  0x56   :  { %3462 = shalt.err (!%p3459_p12)
}
  0x57   :  { %s3463_s7 = scalar_lea.vmem %s68_s4, 16  ;;  %s3467_s28 = scalar_lea.vmem %s68_s4, 32 }
  0x58   :  { %p3464_p13 = scmp.ne.s32.totalorder %s68_s4, %s3463_s7  ;;  %p3468_p0 = scmp.lt.s32.totalorder %s68_s4, %s68_s4 }
  0x59   :  { %p3469_p1 = scmp.lt.s32.totalorder %s3467_s28, %s3463_s7 }
  0x5b   :  { %p3470_p2 = por %p3469_p1, %p3468_p0 }
  0x5d   :  { %p3471_p3 = pnand %p3470_p2, %p3464_p13 }
  0x5f   :  { %3474 = shalt.err (!%p3471_p3)
}
  0x60   :  { %70 = dma.hbm_to_vmem [thread:$0]  %s4640_s0, 16, %s68_s4, [#allocation6]  }
  0x61   :  { %s3555_s8 = smov [#allocation10]   ;;  %s3556_s30 = smov [#allocation11]  }
  0x62   :  { %s89_s25 = sshll.u32 %s3555_s8, 4  ;;  %s123_s26 = sshll.u32 %s3556_s30, 4  ;;  %s90_s25 = int_to_ptr.vmem [resolvable:$true] %s89_s25  ;;  %s124_s26 = int_to_ptr.vmem [resolvable:$true] %s123_s26 }
  0x63   :  { %s3475_s5 = scalar_lea.hbm %s4607_s9, 16 }
  0x64   :  { %p3476_p4 = scmp.ne.s32.totalorder %s4607_s9, %s3475_s5  ;;  %p3479_p5 = scmp.lt.u32.totalorder %s3475_s5, %s4607_s9 }
  0x66   :  { %p3481_p6 = pnand %p3479_p5, %p3476_p4 }
  0x68   :  { %3484 = shalt.err (!%p3481_p6)
}
  0x69   :  { %s3485_s4 = scalar_lea.vmem %s90_s25, 16  ;;  %s3489_s0 = scalar_lea.vmem %s90_s25, 32 }
  0x6a   :  { %p3486_p7 = scmp.ne.s32.totalorder %s90_s25, %s3485_s4  ;;  %p3490_p8 = scmp.lt.s32.totalorder %s90_s25, %s90_s25 }
  0x6b   :  { %p3491_p9 = scmp.lt.s32.totalorder %s3489_s0, %s3485_s4 }
  0x6d   :  { %p3492_p10 = por %p3491_p9, %p3490_p8 }
  0x6f   :  { %p3493_p11 = pnand %p3492_p10, %p3486_p7 }
  0x71   :  { %3496 = shalt.err (!%p3493_p11)
}
  0x72   :  { %92 = dma.hbm_to_vmem [thread:$0]  %s4607_s9, 16, %s90_s25, [#allocation9]  }
  0x73   :  { %s3497_s30 = scalar_lea.hbm %s4620_s22, 16 }
  0x74   :  { %p3498_p12 = scmp.ne.s32.totalorder %s4620_s22, %s3497_s30  ;;  %p3501_p13 = scmp.lt.u32.totalorder %s3497_s30, %s4620_s22 }
  0x76   :  { %p3503_p0 = pnand %p3501_p13, %p3498_p12 }
  0x78   :  { %3506 = shalt.err (!%p3503_p0)
}
  0x79   :  { %s3507_s6 = scalar_lea.vmem %s124_s26, 16  ;;  %s3511_s27 = scalar_lea.vmem %s124_s26, 32 }
  0x7a   :  { %p3508_p1 = scmp.ne.s32.totalorder %s124_s26, %s3507_s6  ;;  %p3512_p2 = scmp.lt.s32.totalorder %s124_s26, %s124_s26 }
  0x7b   :  { %p3513_p3 = scmp.lt.s32.totalorder %s3511_s27, %s3507_s6 }
  0x7d   :  { %p3514_p4 = por %p3513_p3, %p3512_p2 }
  0x7f   :  { %p3515_p5 = pnand %p3514_p4, %p3508_p1 }
  0x81   :  { %3518 = shalt.err (!%p3515_p5)
}
  0x82   :  { %126 = dma.hbm_to_vmem [thread:$0]  %s4620_s22, 16, %s124_s26, [#allocation12]  }
  0x83   :  { %3541 = dma.done.wait [#allocation3], 64  }
  0x84   :  { %3542 = vsyncadd [#allocation3], 4294967232 }
  0x85   :  { %3543 = dma.done.wait [#allocation6], 32  }
  0x86   :  { %3544 = vsyncadd [#allocation6], 4294967264 }
  0x87   :  { %3545 = dma.done.wait [#allocation9], 80  }
  0x88   :  { %3546 = vsyncadd [#allocation9], 4294967216 }
  0x89   :  { %3547 = dma.done.wait [#allocation12], 16  }
  0x8a   :  { %3548 = vsyncadd [#allocation12], 4294967280  ;;  %v171_v0 = vlaneseq  ;;  %v3557_v1 = vmov 0   ;;  %s4641_s0 = sld [smem:[#allocation19_spill]]  ;;  %v3558_v15 = vmov 0.0   ;;  %s4642_s25 = sld [smem:[#allocation23_spill]] }
  0x8b   :  { %3386 = vset.pattern.permute.xlu0 %v3557_v1  ;;  %3385 = vset.pattern.permute.xlu1 %v3557_v1  ;;  %s4643_s9 = sld [smem:[#allocation24_spill]]  ;;  %s3560_s28 = smov 16   ;;  %vm1361_vm10 = vcmask 64512   ;;  %vm1370_vm11 = vcmask 130048   ;;  %vm1385_vm12 = vcmask 195584   ;;  %vm1547_vm13 = vcmask 523264  }
  0x8c   :  { %v3756_v2 = vshrl.u32 %v171_v0, 7  ;;  %s4644_s8 = sld [smem:[#allocation20_spill]]  ;;  %s4645_s30 = sld [smem:[#allocation26_spill]] }
  0x8e   :  { %v192_v3 = vand.u32 63, %v3756_v2  ;;  %vm492_vm0 = vcmp.lt.s32.totalorder %v3756_v2, 1  ;;  %vm541_vm2 = vcmp.lt.s32.totalorder %v3756_v2, 7  ;;  %v180_v40 = vadd.s32 64, %v3756_v2 }
  0x8f   :  { %v3830_v46 = vadd.s32 56, %v3756_v2 }
  0x90   :  { %v146_v4 = vld [vmem:[%s4641_s0 + $0x8] sm:$0xff]  ;;  %v3765_v5 = vld [vmem:[%s4641_s0] sm:$0xff]  ;;  %v147_v6 = vld [vmem:[%s4641_s0 + $0x10] sm:$0xff]  ;;  %vm380_vm1 = vcmp.gt.s32.totalorder %v192_v3, 0  ;;  %v248_v45 = vand.u32 63, %v180_v40 }
  0x91   :  { %681 = vperm.xlu0 %3386, %v146_v4   ;;  %v477_v7 = vrot.slane %v146_v4, 7  ;;  %676 = vperm.xlu1 %3385, %v3765_v5   ;;  %v476_v8 = vrot.slane %v3765_v5, 7  ;;  %v3776_v9 = vld [vmem:[%s4641_s0 + $0x78] sm:$0xff]  ;;  %v526_v10 = vrot.slane %v146_v4, 1  ;;  %v525_v11 = vrot.slane %v3765_v5, 1  ;;  %v149_v26 = vld [vmem:[%s4641_s0 + $0x20] sm:$0xff] }
  0x92   :  { %v478_v12 = vrot.slane %v147_v6, 7  ;;  %v491_v13 = vrot.slane %v3776_v9, 7  ;;  %v2898_v16 = vsel %vm380_vm1, 1.0, %v3558_v15  ;;  %v527_v17 = vrot.slane %v147_v6, 1  ;;  %v148_v21 = vld [vmem:[%s4641_s0 + $0x18] sm:$0xff]  ;;  %v150_v32 = vld [vmem:[%s4641_s0 + $0x28] sm:$0xff] }
  0x93   :  { %v507_v14 = vsel %vm492_vm0, %v476_v8, %v477_v7  ;;  %v556_v19 = vsel %vm541_vm2, %v525_v11, %v526_v10  ;;  %v479_v24 = vrot.slane %v148_v21, 7  ;;  %v528_v25 = vrot.slane %v148_v21, 1  ;;  %v151_v36 = vld [vmem:[%s4641_s0 + $0x30] sm:$0xff]  ;;  %v152_v43 = vld [vmem:[%s4641_s0 + $0x38] sm:$0xff]  ;;  %v153_v44 = vld [vmem:[%s4641_s0 + $0x40] sm:$0xff] }
  0x94   :  { %v506_v18 = vsel %vm492_vm0, %v477_v7, %v478_v12  ;;  %v508_v20 = vsel %vm492_vm0, %v491_v13, %v476_v8  ;;  %v555_v23 = vsel %vm541_vm2, %v526_v10, %v527_v17  ;;  %v480_v29 = vrot.slane %v149_v26, 7  ;;  %v154_v60 = vld [vmem:[%s4641_s0 + $0x48] sm:$0xff]  ;;  %v155_v0 = vld [vmem:[%s4641_s0 + $0x50] sm:$0xff]  ;;  %v156_v8 = vld [vmem:[%s4641_s0 + $0x58] sm:$0xff] }
  0x95   :  { %686 = vperm.xlu1 %3385, %v147_v6   ;;  %581 = vperm.xlu0 %3386, %v507_v14   ;;  %v509_v22 = vmul.f32 %v2898_v16, %v508_v20  ;;  %v505_v27 = vsel %vm492_vm0, %v478_v12, %v479_v24  ;;  %v554_v28 = vsel %vm541_vm2, %v527_v17, %v528_v25  ;;  %v529_v31 = vrot.slane %v149_v26, 1  ;;  %v157_v16 = vld [vmem:[%s4641_s0 + $0x60] sm:$0xff] }
  0x96   :  { %v504_v30 = vsel %vm492_vm0, %v479_v24, %v480_v29  ;;  %v481_v34 = vrot.slane %v150_v32, 7  ;;  %v530_v35 = vrot.slane %v150_v32, 1  ;;  %v482_v39 = vrot.slane %v151_v36, 7 }
  0x97   :  { %v553_v33 = vsel %vm541_vm2, %v528_v25, %v529_v31  ;;  %v531_v42 = vrot.slane %v151_v36, 1  ;;  %v483_v47 = vrot.slane %v152_v43, 7  ;;  %v532_v49 = vrot.slane %v152_v43, 1 }
  0x98   :  { %v503_v37 = vsel %vm492_vm0, %v480_v29, %v481_v34  ;;  %v552_v38 = vsel %vm541_vm2, %v529_v31, %v530_v35  ;;  %v502_v41 = vsel %vm492_vm0, %v481_v34, %v482_v39  ;;  %v484_v50 = vrot.slane %v153_v44, 7 }
  0x99   :  { %586 = vperm.xlu1 %3385, %v506_v18   ;;  %792 = vperm.xlu0 %3386, %v556_v19   ;;  %v551_v48 = vsel %vm541_vm2, %v530_v35, %v531_v42  ;;  %vm388_vm3 = vcmp.gt.s32.totalorder %v248_v45, 0  ;;  %v241_v51 = vand.u32 63, %v3830_v46  ;;  %v501_v52 = vsel %vm492_vm0, %v482_v39, %v483_v47 }
  0x9a   :  { %v550_v53 = vsel %vm541_vm2, %v531_v42, %v532_v49  ;;  %v2899_v54 = vsel %vm388_vm3, 1.0, %v3558_v15  ;;  %v500_v55 = vsel %vm492_vm0, %v483_v47, %v484_v50  ;;  %v533_v56 = vrot.slane %v153_v44, 1 }
  0x9b   :  { %vm435_vm4 = vcmp.lt.s32.totalorder %v241_v51, 63  ;;  %v517_v57 = vmul.f32 %v2899_v54, %v500_v55  ;;  %v485_v62 = vrot.slane %v154_v60, 7  ;;  %v534_v63 = vrot.slane %v154_v60, 1 }
  0x9c   :  { %v2900_v58 = vsel %vm435_vm4, 1.0, %v3558_v15  ;;  %v549_v59 = vsel %vm541_vm2, %v532_v49, %v533_v56  ;;  %v486_v4 = vrot.slane %v155_v0, 7  ;;  %v535_v7 = vrot.slane %v155_v0, 1 }
  0x9d   :  { %797 = vperm.xlu1 %3385, %v555_v23   ;;  %576 = vperm.xlu0 %3386, %v509_v22   ;;  %v565_v61 = vmul.f32 %v2900_v58, %v549_v59  ;;  %v499_v1 = vsel %vm492_vm0, %v484_v50, %v485_v62  ;;  %v548_v3 = vsel %vm541_vm2, %v533_v56, %v534_v63  ;;  %v487_v12 = vrot.slane %v156_v8, 7  ;;  %v158_v22 = vld [vmem:[%s4641_s0 + $0x68] sm:$0xff] }
  0x9e   :  { %v498_v6 = vsel %vm492_vm0, %v485_v62, %v486_v4  ;;  %v547_v10 = vsel %vm541_vm2, %v534_v63, %v535_v7  ;;  %v536_v14 = vrot.slane %v156_v8, 1  ;;  %v488_v19 = vrot.slane %v157_v16, 7 }
  0x9f   :  { %v497_v17 = vsel %vm492_vm0, %v486_v4, %v487_v12  ;;  %v489_v24 = vrot.slane %v158_v22, 7  ;;  %v538_v25 = vrot.slane %v158_v22, 1  ;;  %v540_v35 = vrot.slane %v3776_v9, 1 }
  0xa0   :  { %v546_v18 = vsel %vm541_vm2, %v535_v7, %v536_v14  ;;  %v496_v20 = vsel %vm492_vm0, %v487_v12, %v488_v19  ;;  %v756_v5 = vsub.s32 1, %v3756_v2  ;;  %vm2283_vm3 = vcmask 261120  }
  0xa1   :  { %591 = vperm.xlu1 %3385, %v505_v27   ;;  %802 = vperm.xlu0 %3386, %v554_v28   ;;  %v495_v27 = vsel %vm492_vm0, %v488_v19, %v489_v24  ;;  %v557_v39 = vsel %vm541_vm2, %v540_v35, %v525_v11  ;;  %vm2796_vm4 = vcmask 654336  }
  0xa5   :  { %691 = vperm.xlu1 %3385, %v148_v21   ;;  %596 = vperm.xlu0 %3386, %v504_v30   ;;  %v537_v21 = vrot.slane %v157_v16, 1  ;;  %v187_v30 = vadd.s32 120, %v3756_v2 }
  0xa7   :  { %v545_v23 = vsel %vm541_vm2, %v536_v14, %v537_v21  ;;  %v544_v28 = vsel %vm541_vm2, %v537_v21, %v538_v25 }
  0xa9   :  { %807 = vperm.xlu1 %3385, %v553_v33   ;;  %696 = vperm.xlu0 %3386, %v149_v26   ;;  %v159_v26 = vld [vmem:[%s4641_s0 + $0x70] sm:$0xff]  ;;  %v297_v33 = vand.u32 63, %v187_v30 }
  0xaa   :  { %v490_v29 = vrot.slane %v159_v26, 7 }
  0xab   :  { %vm443_vm5 = vcmp.lt.s32.totalorder %v297_v33, 63 }
  0xac   :  { %v494_v31 = vsel %vm492_vm0, %v489_v24, %v490_v29 }
  0xad   :  { %601 = vperm.xlu1 %3385, %v503_v37   ;;  %812 = vperm.xlu0 %3386, %v552_v38   ;;  %v2901_v38 = vsel %vm443_vm5, 1.0, %v3558_v15  ;;  %vm2722_vm5 = vcmask 326656  }
  0xae   :  { %v573_v40 = vmul.f32 %v2901_v38, %v557_v39 }
  0xb1   :  { %701 = vperm.xlu1 %3385, %v150_v32   ;;  %606 = vperm.xlu0 %3386, %v502_v41   ;;  %v539_v32 = vrot.slane %v159_v26, 1 }
  0xb3   :  { %v543_v34 = vsel %vm541_vm2, %v538_v25, %v539_v32  ;;  %v542_v37 = vsel %vm541_vm2, %v539_v32, %v540_v35 }
  0xb5   :  { %817 = vperm.xlu1 %3385, %v551_v48   ;;  %706 = vperm.xlu0 %3386, %v151_v36   ;;  %v493_v36 = vsel %vm492_vm0, %v490_v29, %v491_v13  ;;  %v163_v13 = vld [vmem:[%s4642_s25] sm:$0xff]  ;;  %v872_v48 = vsub.s32 2, %v3756_v2 }
  0xb6   :  { %3086 = vmatprep.mubr.f32.mxu0 %v163_v13 }
  0xb9   :  { %611 = vperm.xlu1 %3385, %v501_v52   ;;  %822 = vperm.xlu0 %3386, %v550_v53  }
  0xbd   :  { %711 = vperm.xlu1 %3385, %v152_v43   ;;  %616 = vperm.xlu0 %3386, %v517_v57   ;;  %v656_v43 = vsub.s32 0, %v3756_v2 }
  0xc1   :  { %827 = vperm.xlu1 %3385, %v565_v61   ;;  %716 = vperm.xlu0 %3386, %v153_v44   ;;  %v161_v44 = vld [vmem:[#allocation2] sm:$0x7]  ;;  %v3925_v61 = vld [vmem:[#allocation5] ss:$0 sm:$0xff] }
  0xc2   :  { %v3908_v47 = vrot.slane %v161_v44, %v656_v43  ;;  %v3919_v53 = vrot.slane %v161_v44, %v872_v48 }
  0xc5   :  { %621 = vperm.xlu1 %3385, %v499_v1   ;;  %832 = vperm.xlu0 %3386, %v548_v3  }
  0xc9   :  { %721 = vperm.xlu1 %3385, %v154_v60   ;;  %626 = vperm.xlu0 %3386, %v498_v6  }
  0xcd   :  { %837 = vperm.xlu1 %3385, %v547_v10   ;;  %726 = vperm.xlu0 %3386, %v155_v0  }
  0xd1   :  { %631 = vperm.xlu1 %3385, %v497_v17   ;;  %842 = vperm.xlu0 %3386, %v546_v18  }
  0xd5   :  { %731 = vperm.xlu1 %3385, %v156_v8   ;;  %636 = vperm.xlu0 %3386, %v496_v20  }
  0xd9   :  { %847 = vperm.xlu1 %3385, %v545_v23   ;;  %736 = vperm.xlu0 %3386, %v157_v16  }
  0xdd   :  { %641 = vperm.xlu1 %3385, %v495_v27   ;;  %852 = vperm.xlu0 %3386, %v544_v28  }
  0xe1   :  { %741 = vperm.xlu1 %3385, %v158_v22   ;;  %646 = vperm.xlu0 %3386, %v494_v31  }
  0xe5   :  { %857 = vperm.xlu1 %3385, %v543_v34   ;;  %746 = vperm.xlu0 %3386, %v159_v26  }
  0xe9   :  { %651 = vperm.xlu1 %3385, %v493_v36   ;;  %862 = vperm.xlu0 %3386, %v542_v37  }
  0xed   :  { %867 = vperm.xlu1 %3385, %v573_v40   ;;  %751 = vperm.xlu0 %3386, %v3776_v9   ;;  %v3912_v9 = vrot.slane %v161_v44, %v756_v5 }
 0x110   :  { %v682_v41 = vpop.permute.xlu0 %681  ;;  %v677_v42 = vpop.permute.xlu1 %676 }
 0x111   :  { %v759_v52 = vmul.f32 %v3912_v9, %v682_v41  ;;  %v758_v54 = vmul.f32 %v3912_v9, %v677_v42 }
 0x114   :  { %v687_v45 = vpop.permute.xlu1 %686  ;;  %v582_v11 = vpop.permute.xlu0 %581 }
 0x115   :  { %v659_v51 = vmul.f32 %v3908_v47, %v582_v11  ;;  %v760_v62 = vmul.f32 %v3912_v9, %v687_v45 }
 0x117   :  { %v775_v57 = vadd.f32 %v759_v52, %v659_v51 }
 0x118   :  { %v587_v49 = vpop.permute.xlu1 %586  ;;  %v793_v50 = vpop.permute.xlu0 %792 }
 0x119   :  { %v660_v58 = vmul.f32 %v3908_v47, %v587_v49  ;;  %v874_v63 = vmul.f32 %v3919_v53, %v793_v50 }
 0x11b   :  { %v776_v6 = vadd.f32 %v760_v62, %v660_v58 }
 0x11c   :  { %v798_v55 = vpop.permute.xlu1 %797  ;;  %v577_v56 = vpop.permute.xlu0 %576 }
 0x11d   :  { %v875_v59 = vmul.f32 %v3919_v53, %v798_v55  ;;  %v658_v60 = vmul.f32 %v3908_v47, %v577_v56 }
 0x11f   :  { %v891_v0 = vadd.f32 %v875_v59, %v775_v57  ;;  %v774_v1 = vadd.f32 %v758_v54, %v658_v60 }
 0x120   :  { %v592_v3 = vpop.permute.xlu1 %591  ;;  %v803_v4 = vpop.permute.xlu0 %802 }
 0x121   :  { %v913_v7 = vadd.f32 %v3925_v61, %v891_v0  ;;  %v890_v8 = vadd.f32 %v874_v63, %v774_v1  ;;  %v876_v10 = vmul.f32 %v3919_v53, %v803_v4  ;;  %v661_v22 = vmul.f32 %v3908_v47, %v592_v3 }
 0x123   :  { %v892_v12 = vadd.f32 %v876_v10, %v776_v6  ;;  %v912_v14 = vadd.f32 %v3925_v61, %v890_v8  ;;  %v929_v16 = vmax.f32 %v913_v7, 0.0 }
 0x124   :  { %v692_v17 = vpop.permute.xlu1 %691  ;;  %v597_v18 = vpop.permute.xlu0 %596 }
 0x125   :  { %v914_v19 = vadd.f32 %v3925_v61, %v892_v12  ;;  %v761_v20 = vmul.f32 %v3912_v9, %v692_v17  ;;  %v928_v21 = vmax.f32 %v912_v14, 0.0  ;;  %v945_v24 = vrot.slane %v929_v16, 1 }
 0x126   :  { %v662_v33 = vmul.f32 %v3908_v47, %v597_v18 }
 0x127   :  { %v930_v23 = vmax.f32 %v914_v19, 0.0  ;;  %v3935_v27 = vrot.slane %v928_v21, 1  ;;  %v777_v29 = vadd.f32 %v761_v20, %v661_v22 }
 0x128   :  { %v808_v25 = vpop.permute.xlu1 %807  ;;  %v697_v26 = vpop.permute.xlu0 %696 }
 0x129   :  { %v946_v28 = vrot.slane %v930_v23, 1  ;;  %v877_v30 = vmul.f32 %v3919_v53, %v808_v25  ;;  %v762_v31 = vmul.f32 %v3912_v9, %v697_v26  ;;  %v974_v32 = vsel %vm541_vm2, %v3935_v27, %v945_v24 }
 0x12a   :  { %v976_v38 = vmax.f32 %v928_v21, %v974_v32 }
 0x12b   :  { %v893_v34 = vadd.f32 %v877_v30, %v777_v29  ;;  %v973_v35 = vsel %vm541_vm2, %v945_v24, %v946_v28  ;;  %v778_v13 = vadd.f32 %v762_v31, %v662_v33 }
 0x12c   :  { %v602_v36 = vpop.permute.xlu1 %601  ;;  %v813_v37 = vpop.permute.xlu0 %812  ;;  %v977_v39 = vmax.f32 %v929_v16, %v973_v35 }
 0x12d   :  { %v915_v40 = vadd.f32 %v3925_v61, %v893_v34  ;;  %v878_v41 = vmul.f32 %v3919_v53, %v813_v37  ;;  %v663_v54 = vmul.f32 %v3908_v47, %v602_v36 }
 0x12e   :  { %v3254_v42 = vpack.c.bf16 %v977_v39, %v976_v38 }
 0x12f   :  { %v931_v44 = vmax.f32 %v915_v40, 0.0  ;;  %v894_v45 = vadd.f32 %v878_v41, %v778_v13 }
 0x130   :  { %v702_v11 = vpop.permute.xlu1 %701  ;;  %3255 = vmatprep.subr.bf16.mxu0 %v3254_v42  ;;  %v607_v49 = vpop.permute.xlu0 %606 }
 0x131   :  { %v947_v50 = vrot.slane %v931_v44, 1  ;;  %v916_v51 = vadd.f32 %v3925_v61, %v894_v45  ;;  %v763_v52 = vmul.f32 %v3912_v9, %v702_v11  ;;  %3257 = vmatpush3.bf16.msra.mxu0 %v3254_v42  ;;  %v664_v0 = vmul.f32 %v3908_v47, %v607_v49 }
 0x133   :  { %v932_v55 = vmax.f32 %v916_v51, 0.0  ;;  %v779_v56 = vadd.f32 %v763_v52, %v663_v54  ;;  %v972_v63 = vsel %vm541_vm2, %v946_v28, %v947_v50 }
 0x134   :  { %v818_v57 = vpop.permute.xlu1 %817  ;;  %v707_v58 = vpop.permute.xlu0 %706  ;;  %v978_v7 = vmax.f32 %v930_v23, %v972_v63 }
 0x135   :  { %v948_v59 = vrot.slane %v932_v55, 1  ;;  %v879_v60 = vmul.f32 %v3919_v53, %v818_v57  ;;  %v764_v62 = vmul.f32 %v3912_v9, %v707_v58 }
 0x137   :  { %v895_v1 = vadd.f32 %v879_v60, %v779_v56  ;;  %v971_v3 = vsel %vm541_vm2, %v947_v50, %v948_v59  ;;  %v780_v12 = vadd.f32 %v764_v62, %v664_v0 }
 0x138   :  { %v612_v4 = vpop.permute.xlu1 %611  ;;  %v823_v6 = vpop.permute.xlu0 %822  ;;  %v979_v8 = vmax.f32 %v931_v44, %v971_v3 }
 0x139   :  { %v917_v10 = vadd.f32 %v3925_v61, %v895_v1  ;;  %v880_v14 = vmul.f32 %v3919_v53, %v823_v6  ;;  %v665_v23 = vmul.f32 %v3908_v47, %v612_v4 }
 0x13a   :  { %v3258_v16 = vpack.c.bf16 %v979_v8, %v978_v7 }
 0x13b   :  { %v933_v17 = vmax.f32 %v917_v10, 0.0  ;;  %v896_v18 = vadd.f32 %v880_v14, %v780_v12 }
 0x13c   :  { %v712_v19 = vpop.permute.xlu1 %711  ;;  %3259 = vmatprep.subr.bf16.mxu0 %v3258_v16  ;;  %v617_v20 = vpop.permute.xlu0 %616 }
 0x13d   :  { %v949_v21 = vrot.slane %v933_v17, 1  ;;  %v918_v22 = vadd.f32 %v3925_v61, %v896_v18  ;;  %v765_v24 = vmul.f32 %v3912_v9, %v712_v19  ;;  %3261 = vmatpush3.bf16.msra.mxu0 %v3258_v16  ;;  %v666_v34 = vmul.f32 %v3908_v47, %v617_v20 }
 0x13f   :  { %v934_v25 = vmax.f32 %v918_v22, 0.0  ;;  %v781_v26 = vadd.f32 %v765_v24, %v665_v23  ;;  %v970_v33 = vsel %vm541_vm2, %v948_v59, %v949_v21 }
 0x140   :  { %v828_v28 = vpop.permute.xlu1 %827  ;;  %v717_v29 = vpop.permute.xlu0 %716  ;;  %v980_v39 = vmax.f32 %v932_v55, %v970_v33 }
 0x141   :  { %v950_v30 = vrot.slane %v934_v25, 1  ;;  %v881_v31 = vmul.f32 %v3919_v53, %v828_v28  ;;  %v766_v32 = vmul.f32 %v3912_v9, %v717_v29 }
 0x143   :  { %v897_v35 = vadd.f32 %v881_v31, %v781_v26  ;;  %v969_v36 = vsel %vm541_vm2, %v949_v21, %v950_v30  ;;  %v782_v41 = vadd.f32 %v766_v32, %v666_v34 }
 0x144   :  { %v622_v37 = vpop.permute.xlu1 %621  ;;  %v833_v38 = vpop.permute.xlu0 %832  ;;  %v981_v40 = vmax.f32 %v933_v17, %v969_v36 }
 0x145   :  { %v919_v13 = vadd.f32 %v3925_v61, %v897_v35  ;;  %v882_v42 = vmul.f32 %v3919_v53, %v833_v38  ;;  %v667_v55 = vmul.f32 %v3908_v47, %v622_v37 }
 0x146   :  { %v3262_v44 = vpack.c.bf16 %v981_v40, %v980_v39 }
 0x147   :  { %v935_v45 = vmax.f32 %v919_v13, 0.0  ;;  %v898_v11 = vadd.f32 %v882_v42, %v782_v41 }
 0x148   :  { %v722_v49 = vpop.permute.xlu1 %721  ;;  %3263 = vmatprep.subr.bf16.mxu0 %v3262_v44  ;;  %v627_v50 = vpop.permute.xlu0 %626 }
 0x149   :  { %v951_v51 = vrot.slane %v935_v45, 1  ;;  %v920_v52 = vadd.f32 %v3925_v61, %v898_v11  ;;  %v767_v54 = vmul.f32 %v3912_v9, %v722_v49  ;;  %3265 = vmatpush3.bf16.msra.mxu0 %v3262_v44  ;;  %v668_v1 = vmul.f32 %v3908_v47, %v627_v50 }
 0x14b   :  { %v936_v56 = vmax.f32 %v920_v52, 0.0  ;;  %v783_v57 = vadd.f32 %v767_v54, %v667_v55  ;;  %v968_v0 = vsel %vm541_vm2, %v950_v30, %v951_v51 }
 0x14c   :  { %v838_v58 = vpop.permute.xlu1 %837  ;;  %v727_v59 = vpop.permute.xlu0 %726  ;;  %v982_v8 = vmax.f32 %v934_v25, %v968_v0 }
 0x14d   :  { %v952_v60 = vrot.slane %v936_v56, 1  ;;  %v883_v62 = vmul.f32 %v3919_v53, %v838_v58  ;;  %v768_v63 = vmul.f32 %v3912_v9, %v727_v59 }
 0x14f   :  { %v899_v3 = vadd.f32 %v883_v62, %v783_v57  ;;  %v967_v4 = vsel %vm541_vm2, %v951_v51, %v952_v60  ;;  %v784_v14 = vadd.f32 %v768_v63, %v668_v1 }
 0x150   :  { %v632_v6 = vpop.permute.xlu1 %631  ;;  %v843_v7 = vpop.permute.xlu0 %842  ;;  %v983_v10 = vmax.f32 %v935_v45, %v967_v4 }
 0x151   :  { %v921_v12 = vadd.f32 %v3925_v61, %v899_v3  ;;  %v884_v16 = vmul.f32 %v3919_v53, %v843_v7  ;;  %v669_v25 = vmul.f32 %v3908_v47, %v632_v6 }
 0x152   :  { %v3266_v17 = vpack.c.bf16 %v983_v10, %v982_v8 }
 0x153   :  { %v937_v18 = vmax.f32 %v921_v12, 0.0  ;;  %v900_v19 = vadd.f32 %v884_v16, %v784_v14 }
 0x154   :  { %v732_v20 = vpop.permute.xlu1 %731  ;;  %3267 = vmatprep.subr.bf16.mxu0 %v3266_v17  ;;  %v637_v21 = vpop.permute.xlu0 %636 }
 0x155   :  { %v953_v22 = vrot.slane %v937_v18, 1  ;;  %v922_v24 = vadd.f32 %v3925_v61, %v900_v19  ;;  %v769_v23 = vmul.f32 %v3912_v9, %v732_v20  ;;  %3269 = vmatpush3.bf16.msra.mxu0 %v3266_v17  ;;  %v670_v35 = vmul.f32 %v3908_v47, %v637_v21 }
 0x157   :  { %v938_v26 = vmax.f32 %v922_v24, 0.0  ;;  %v785_v28 = vadd.f32 %v769_v23, %v669_v25  ;;  %v966_v34 = vsel %vm541_vm2, %v952_v60, %v953_v22 }
 0x158   :  { %v848_v29 = vpop.permute.xlu1 %847  ;;  %v737_v30 = vpop.permute.xlu0 %736  ;;  %v984_v40 = vmax.f32 %v936_v56, %v966_v34 }
 0x159   :  { %v954_v31 = vrot.slane %v938_v26, 1  ;;  %v885_v32 = vmul.f32 %v3919_v53, %v848_v29  ;;  %v770_v33 = vmul.f32 %v3912_v9, %v737_v30 }
 0x15b   :  { %v901_v36 = vadd.f32 %v885_v32, %v785_v28  ;;  %v965_v37 = vsel %vm541_vm2, %v953_v22, %v954_v31  ;;  %v786_v42 = vadd.f32 %v770_v33, %v670_v35 }
 0x15c   :  { %v642_v38 = vpop.permute.xlu1 %641  ;;  %v853_v39 = vpop.permute.xlu0 %852  ;;  %v985_v13 = vmax.f32 %v937_v18, %v965_v37 }
 0x15d   :  { %v923_v41 = vadd.f32 %v3925_v61, %v901_v36  ;;  %v886_v44 = vmul.f32 %v3919_v53, %v853_v39  ;;  %v671_v56 = vmul.f32 %v3908_v47, %v642_v38 }
 0x15e   :  { %v3270_v45 = vpack.c.bf16 %v985_v13, %v984_v40 }
 0x15f   :  { %v939_v11 = vmax.f32 %v923_v41, 0.0  ;;  %v902_v49 = vadd.f32 %v886_v44, %v786_v42  ;;  %v164_v41 = vld [vmem:[%s4642_s25 + $0x8] sm:$0xff]  ;;  %v165_v42 = vld [vmem:[%s4642_s25 + $0x10] sm:$0xff]  ;;  %v166_v44 = vld [vmem:[%s4642_s25 + $0x18] sm:$0xff] }
 0x160   :  { %v742_v50 = vpop.permute.xlu1 %741  ;;  %3271 = vmatprep.subr.bf16.mxu0 %v3270_v45  ;;  %v647_v51 = vpop.permute.xlu0 %646 }
 0x161   :  { %v955_v52 = vrot.slane %v939_v11, 1  ;;  %v924_v54 = vadd.f32 %v3925_v61, %v902_v49  ;;  %v771_v55 = vmul.f32 %v3912_v9, %v742_v50  ;;  %3273 = vmatpush3.bf16.msra.mxu0 %v3270_v45  ;;  %v672_v3 = vmul.f32 %v3908_v47, %v647_v51  ;;  %v168_v45 = vld [vmem:[%s4642_s25 + $0x28] sm:$0xff]  ;;  %v170_v49 = vld [vmem:[%s4642_s25 + $0x38] sm:$0xff]  ;;  %v1097_v50 = vld [vmem:[%s4643_s9] sm:$0xff] }
 0x162   :  { %v1098_v51 = vld [vmem:[%s4643_s9 + $0x8] sm:$0xff] }
 0x163   :  { %v940_v57 = vmax.f32 %v924_v54, 0.0  ;;  %v787_v58 = vadd.f32 %v771_v55, %v671_v56  ;;  %v964_v1 = vsel %vm541_vm2, %v954_v31, %v955_v52  ;;  %v1099_v54 = vld [vmem:[%s4643_s9 + $0x10] sm:$0xff]  ;;  %s3563_s9 = smov [#allocation13]  }
 0x164   :  { %v858_v59 = vpop.permute.xlu1 %857  ;;  %v747_v60 = vpop.permute.xlu0 %746  ;;  %v986_v10 = vmax.f32 %v938_v26, %v964_v1  ;;  %s2886_s7 = sshll.u32 %s3563_s9, 4  ;;  %s2887_s7 = int_to_ptr.vmem [resolvable:$true] %s2886_s7 }
 0x165   :  { %v956_v62 = vrot.slane %v940_v57, 1  ;;  %v887_v63 = vmul.f32 %v3919_v53, %v858_v59  ;;  %v772_v0 = vmul.f32 %v3912_v9, %v747_v60  ;;  %p3524_p7 = scmp.lt.s32.totalorder %s2887_s7, %s2887_s7 }
 0x167   :  { %v903_v4 = vadd.f32 %v887_v63, %v787_v58  ;;  %v963_v6 = vsel %vm541_vm2, %v955_v52, %v956_v62  ;;  %v788_v16 = vadd.f32 %v772_v0, %v672_v3  ;;  %v3286_v52 = vpack.c.bf16 %v1098_v51, %v1097_v50  ;;  %v1647_v50 = vld [vmem:[%s4644_s8 + $0x10] sm:$0xff] }
 0x168   :  { %v652_v7 = vpop.permute.xlu1 %651  ;;  %v863_v8 = vpop.permute.xlu0 %862  ;;  %v987_v12 = vmax.f32 %v939_v11, %v963_v6  ;;  %v169_v11 = vld [vmem:[%s4642_s25 + $0x30] sm:$0xff]  ;;  %v4061_v6 = vadd.s32 24, %v3756_v2 }
 0x169   :  { %v925_v14 = vadd.f32 %v3925_v61, %v903_v4  ;;  %v888_v17 = vmul.f32 %v3919_v53, %v863_v8  ;;  %v673_v23 = vmul.f32 %v3908_v47, %v652_v7  ;;  %3287 = vmatprep.subr.bf16.mxu1 %v3286_v52 }
 0x16a   :  { %v3274_v18 = vpack.c.bf16 %v987_v12, %v986_v10  ;;  %3289 = vmatpush3.bf16.msra.mxu1 %v3286_v52 }
 0x16b   :  { %v941_v19 = vmax.f32 %v925_v14, 0.0  ;;  %v904_v20 = vadd.f32 %v888_v17, %v788_v16  ;;  %3102 = vmatprep.subr.mxu1 %v1099_v54 }
 0x16c   :  { %v868_v21 = vpop.permute.xlu1 %867  ;;  %3275 = vmatprep.subr.bf16.mxu0 %v3274_v18  ;;  %v752_v22 = vpop.permute.xlu0 %751 }
 0x16d   :  { %v957_v24 = vrot.slane %v941_v19, 1  ;;  %v926_v25 = vadd.f32 %v3925_v61, %v904_v20  ;;  %v773_v28 = vmul.f32 %v3912_v9, %v752_v22  ;;  %3277 = vmatpush3.bf16.msra.mxu0 %v3274_v18  ;;  %v889_v29 = vmul.f32 %v3919_v53, %v868_v21 }
 0x16e   :  { %3103 = vmatpush3.msra.mxu1 %v1099_v54  ;;  %v1130_v21 = vand.u32 31, %v4061_v6 }
 0x16f   :  { %v942_v26 = vmax.f32 %v926_v25, 0.0  ;;  %v789_v30 = vadd.f32 %v773_v28, %v673_v23  ;;  %v962_v33 = vsel %vm541_vm2, %v956_v62, %v957_v24 }
 0x170   :  { %v988_v47 = vmax.f32 %v940_v57, %v962_v33  ;;  %vm1228_vm6 = vcmp.lt.s32.totalorder %v1130_v21, 31 }
 0x171   :  { %v958_v31 = vrot.slane %v942_v26, 1  ;;  %v905_v32 = vadd.f32 %v889_v29, %v789_v30 }
 0x173   :  { %v927_v34 = vadd.f32 %v3925_v61, %v905_v32  ;;  %v961_v35 = vsel %vm541_vm2, %v957_v24, %v958_v31 }
 0x174   :  { %v989_v36 = vmax.f32 %v941_v19, %v961_v35 }
 0x175   :  { %v943_v37 = vmax.f32 %v927_v34, 0.0 }
 0x176   :  { %v3278_v38 = vpack.c.bf16 %v989_v36, %v988_v47  ;;  %v4100_v36 = vsel %vm1228_vm6, 1.0, %v3558_v15  ;;  %vm2878_vm6 = vcmask 33792  }
 0x177   :  { %v959_v9 = vrot.slane %v943_v37, 1 }
 0x178   :  { %3279 = vmatprep.subr.bf16.mxu0 %v3278_v38 }
 0x179   :  { %3281 = vmatpush3.bf16.msra.mxu0 %v3278_v38  ;;  %v960_v53 = vsel %vm541_vm2, %v958_v31, %v959_v9  ;;  %v975_v39 = vsel %vm541_vm2, %v959_v9, %v3935_v27  ;;  %v167_v27 = vld [vmem:[%s4642_s25 + $0x20] sm:$0xff]  ;;  %s3559_s25 = smov 8   ;;  %v1158_v9 = vand.u32 31, %v3830_v46  ;;  %v4126_v46 = vld [vmem:[%s4644_s8 + $0x38] sm:$0xff] }
 0x17a   :  { %v990_v40 = vmax.f32 %v942_v26, %v960_v53  ;;  %v991_v13 = vmax.f32 %v943_v37, %v975_v39 }
 0x17b   :  { %vm1232_vm7 = vcmp.lt.s32.totalorder %v1158_v9, 31 }
 0x17c   :  { %v3282_v61 = vpack.c.bf16 %v991_v13, %v990_v40  ;;  %v4121_v13 = vld [vmem:[%s4644_s8] sm:$0xff] }
 0x17e   :  { %3283 = vmatprep.subr.bf16.mxu0 %v3282_v61 }
 0x17f   :  { %3285 = vmatpush3.bf16.msra.mxu0 %v3282_v61  ;;  %v1109_v61 = vand.u32 31, %v3756_v2 }
 0x181   :  { %vm1201_vm8 = vcmp.gt.s32.totalorder %v1109_v61, 0 }
 0x182   :  { %3087 = vmatmul.mubr.f32.vlgmr.msra.gmra.mrb[0].mxu0 %v164_v41  ;;  %v1646_v41 = vld [vmem:[%s4644_s8 + $0x8] sm:$0xff]  ;;  %v4151_v51 = vsel %vm1201_vm8, 1.0, %v3558_v15 }
 0x183   :  { %3089 = vmatprep.mubr.f32.mxu0 %v165_v42  ;;  %v1659_v42 = vrot.slane %v4121_v13, 7 }
 0x186   :  { %3090 = vmatmul.mubr.f32.gmra.mrb[2].mxu0 %v166_v44  ;;  %v1666_v44 = vrot.slane %v4126_v46, 7 }
 0x187   :  { %3092 = vmatprep.mubr.f32.mxu0 %v167_v27  ;;  %v4137_v27 = vsel %vm1232_vm7, 1.0, %v3558_v15 }
 0x18a   :  { %3093 = vmatmul.mubr.f32.gmra.mrb[4].mxu0 %v168_v45  ;;  %v1660_v45 = vrot.slane %v1646_v41, 7 }
 0x18b   :  { %3095 = vmatprep.mubr.f32.mxu0 %v169_v11 }
 0x18c   :  { %v1673_v52 = vsel %vm492_vm0, %v1659_v42, %v1660_v45 }
 0x18e   :  { %3096 = vmatmul.mubr.f32.gmra.mrb[6].mxu0 %v170_v49  ;;  %v1674_v49 = vsel %vm492_vm0, %v1666_v44, %v1659_v42 }
 0x18f   :  { %v1675_v54 = vmul.f32 %v4151_v51, %v1674_v49 }
 0x255   :  { %v3088_v55 = vpop.f32.mrb[0].mxu0 }
 0x256   :  { %v1250_v56 = vrot.slane %v3088_v55, 7  ;;  %v1274_v57 = vrot.slane %v3088_v55, 1  ;;  %1307 = vrot.lane.b32.xlu1 %v3088_v55, %s3559_s25  ;;  %v1058_v58 = vpop.f32.mrb[1].mxu0  ;;  %v1661_v55 = vrot.slane %v1647_v50, 7 }
 0x257   :  { %v1249_v59 = vrot.slane %v1058_v58, 7  ;;  %v1273_v60 = vrot.slane %v1058_v58, 1  ;;  %1305 = vrot.lane.b32.xlu0 %v1058_v58, %s3559_s25  ;;  %v1685_v58 = vrot.slane %v1647_v50, 1 }
 0x259   :  { %v3091_v62 = vpop.f32.mrb[2].mxu0  ;;  %v1287_v63 = vsel %vm541_vm2, %v1273_v60, %v1274_v57  ;;  %v4057_v0 = vsel %vm492_vm0, %v1249_v59, %v1250_v56 }
 0x25a   :  { %v1252_v1 = vrot.slane %v3091_v62, 7  ;;  %v1276_v3 = vrot.slane %v3091_v62, 1  ;;  %1311 = vrot.lane.b32.xlu1 %v3091_v62, %s3559_s25  ;;  %v1068_v4 = vpop.f32.mrb[3].mxu0  ;;  %v1648_v62 = vld [vmem:[%s4644_s8 + $0x18] sm:$0xff] }
 0x25b   :  { %v1251_v7 = vrot.slane %v1068_v4, 7  ;;  %v1275_v8 = vrot.slane %v1068_v4, 1  ;;  %1337 = vrot.lane.b32.xlu0 %v1287_v63, %s3560_s28  ;;  %v1649_v63 = vld [vmem:[%s4644_s8 + $0x20] sm:$0xff] }
 0x25d   :  { %v3094_v10 = vpop.f32.mrb[4].mxu0  ;;  %v1286_v12 = vsel %vm541_vm2, %v1274_v57, %v1275_v8  ;;  %v1285_v14 = vsel %vm541_vm2, %v1275_v8, %v1276_v3  ;;  %v4070_v16 = vsel %vm492_vm0, %v1251_v7, %v1252_v1  ;;  %v4074_v17 = vsel %vm492_vm0, %v1250_v56, %v1251_v7 }
 0x25e   :  { %v1254_v18 = vrot.slane %v3094_v10, 7  ;;  %v1278_v19 = vrot.slane %v3094_v10, 1  ;;  %1339 = vrot.lane.b32.xlu1 %v1286_v12, %s3560_s28  ;;  %v1078_v20 = vpop.f32.mrb[5].mxu0  ;;  %v1672_v56 = vsel %vm492_vm0, %v1660_v45, %v1661_v55  ;;  %v1684_v57 = vrot.slane %v1646_v41, 1 }
 0x25f   :  { %v1253_v22 = vrot.slane %v1078_v20, 7  ;;  %v1277_v24 = vrot.slane %v1078_v20, 1  ;;  %1309 = vrot.lane.b32.xlu0 %v1068_v4, %s3559_s25  ;;  %v1686_v8 = vrot.slane %v1648_v62, 1 }
 0x261   :  { %v3097_v23 = vpop.f32.mrb[6].mxu0  ;;  %v1284_v25 = vsel %vm541_vm2, %v1276_v3, %v1277_v24  ;;  %v1283_v28 = vsel %vm541_vm2, %v1277_v24, %v1278_v19  ;;  %v4085_v26 = vsel %vm492_vm0, %v1252_v1, %v1253_v22  ;;  %v4089_v29 = vsel %vm492_vm0, %v1253_v22, %v1254_v18  ;;  %v1650_v24 = vld [vmem:[%s4644_s8 + $0x28] sm:$0xff] }
 0x262   :  { %v1256_v30 = vrot.slane %v3097_v23, 7  ;;  %v1280_v31 = vrot.slane %v3097_v23, 1  ;;  %1315 = vrot.lane.b32.xlu1 %v3094_v10, %s3559_s25  ;;  %v1088_v32 = vpop.f32.mrb[7].mxu0  ;;  %v1292_v40 = vmul.f32 %v4100_v36, %v1284_v25  ;;  %v1696_v1 = vsel %vm541_vm2, %v1684_v57, %v1685_v58 }
 0x263   :  { %1341 = vrot.lane.b32.xlu0 %v1285_v14, %s3560_s28  ;;  %v1255_v33 = vrot.slane %v1088_v32, 7  ;;  %v1279_v34 = vrot.slane %v1088_v32, 1  ;;  %v1662_v3 = vrot.slane %v1648_v62, 7  ;;  %v1663_v10 = vrot.slane %v1649_v63, 7 }
 0x264   :  { %v1288_v35 = vsel %vm541_vm2, %v1280_v31, %v1273_v60  ;;  %v4097_v47 = vsel %vm492_vm0, %v1256_v30, %v1249_v59  ;;  %v176_v59 = vadd.s32 32, %v3756_v2  ;;  %v1683_v60 = vrot.slane %v4121_v13, 1 }
 0x265   :  { %v1282_v37 = vsel %vm541_vm2, %v1278_v19, %v1279_v34  ;;  %v1281_v38 = vsel %vm541_vm2, %v1279_v34, %v1280_v31  ;;  %v4110_v53 = vsel %vm492_vm0, %v1255_v33, %v1256_v30  ;;  %v4114_v39 = vsel %vm492_vm0, %v1254_v18, %v1255_v33  ;;  %v1651_v30 = vld [vmem:[%s4644_s8 + $0x30] sm:$0xff] }
 0x266   :  { %1319 = vrot.lane.b32.xlu1 %v3097_v23, %s3559_s25  ;;  %v1296_v11 = vmul.f32 %v4137_v27, %v1288_v35  ;;  %v1137_v4 = vand.u32 31, %v176_v59  ;;  %v1697_v7 = vsel %vm541_vm2, %v1683_v60, %v1684_v57  ;;  %v1671_v12 = vsel %vm492_vm0, %v1661_v55, %v1662_v3 }
 0x267   :  { %1313 = vrot.lane.b32.xlu0 %v1078_v20, %s3559_s25  ;;  %v1687_v14 = vrot.slane %v1649_v63, 1  ;;  %v1695_v18 = vsel %vm541_vm2, %v1685_v58, %v1686_v8  ;;  %v1670_v19 = vsel %vm492_vm0, %v1662_v3, %v1663_v10  ;;  %v1664_v25 = vrot.slane %v1650_v24, 7 }
 0x268   :  { %vm1205_vm9 = vcmp.gt.s32.totalorder %v1137_v4, 0  ;;  %v1665_v33 = vrot.slane %v1651_v30, 7  ;;  %v1689_v34 = vrot.slane %v1651_v30, 1  ;;  %v1265_v42 = vmul.f32 %v4151_v51, %v4097_v47 }
 0x269   :  { %v2904_v20 = vsel %vm1205_vm9, 1.0, %v3558_v15  ;;  %v1694_v22 = vsel %vm541_vm2, %v1686_v8, %v1687_v14  ;;  %v1669_v31 = vsel %vm492_vm0, %v1663_v10, %v1664_v25 }
 0x26a   :  { %1343 = vrot.lane.b32.xlu1 %v1292_v40, %s3560_s28  ;;  %v1679_v21 = vmul.f32 %v2904_v20, %v1670_v19  ;;  %v1702_v23 = vmul.f32 %v4100_v36, %v1694_v22  ;;  %v1668_v35 = vsel %vm492_vm0, %v1664_v25, %v1665_v33  ;;  %v1269_v58 = vmul.f32 %v2904_v20, %v4085_v26 }
 0x26b   :  { %1345 = vrot.lane.b32.xlu0 %v1283_v28, %s3560_s28  ;;  %v1688_v28 = vrot.slane %v1650_v24, 1 }
 0x26d   :  { %v1692_v36 = vsel %vm541_vm2, %v1688_v28, %v1689_v34 }
 0x26e   :  { %1347 = vrot.lane.b32.xlu1 %v1282_v37, %s3560_s28  ;;  %v1690_v37 = vrot.slane %v4126_v46, 1 }
 0x26f   :  { %1317 = vrot.lane.b32.xlu0 %v1088_v32, %s3559_s25  ;;  %v1693_v32 = vsel %vm541_vm2, %v1687_v14, %v1688_v28 }
 0x270   :  { %v1698_v9 = vsel %vm541_vm2, %v1690_v37, %v1683_v60  ;;  %v1691_v40 = vsel %vm541_vm2, %v1689_v34, %v1690_v37  ;;  %v1653_v34 = vld [vmem:[#allocation8] sm:$0x7] }
 0x272   :  { %1351 = vrot.lane.b32.xlu1 %v1296_v11, %s3560_s28 }
 0x273   :  { %1349 = vrot.lane.b32.xlu0 %v1281_v38, %s3560_s28  ;;  %v1667_v38 = vsel %vm492_vm0, %v1665_v33, %v1666_v44 }
 0x276   :  { %1714 = vperm.xlu1 %3385, %v1673_v52  }
 0x277   :  { %1709 = vperm.xlu0 %3386, %v1675_v54  }
 0x27a   :  { %1761 = vperm.xlu1 %3385, %v4121_v13   ;;  %v1706_v13 = vmul.f32 %v4137_v27, %v1698_v9 }
 0x27b   :  { %1719 = vperm.xlu0 %3386, %v1672_v56  }
 0x27e   :  { %1771 = vperm.xlu1 %3385, %v1647_v50  }
 0x27f   :  { %1766 = vperm.xlu0 %3386, %v1646_v41  }
 0x282   :  { %1826 = vperm.xlu1 %3385, %v1696_v1  }
 0x283   :  { %1821 = vperm.xlu0 %3386, %v1697_v7  }
 0x286   :  { %1724 = vperm.xlu1 %3385, %v1671_v12  }
 0x287   :  { %1831 = vperm.xlu0 %3386, %v1695_v18  }
 0x28a   :  { %1776 = vperm.xlu1 %3385, %v1648_v62  }
 0x28b   :  { %1729 = vperm.xlu0 %3386, %v1679_v21  }
 0x28e   :  { %1836 = vperm.xlu1 %3385, %v1702_v23  }
 0x28f   :  { %1781 = vperm.xlu0 %3386, %v1649_v63  }
 0x292   :  { %1734 = vperm.xlu1 %3385, %v1669_v31  }
 0x293   :  { %1841 = vperm.xlu0 %3386, %v1693_v32  }
 0x296   :  { %1786 = vperm.xlu1 %3385, %v1650_v24  }
 0x297   :  { %1739 = vperm.xlu0 %3386, %v1668_v35   ;;  %v4246_v35 = vrot.slane %v1653_v34, %v656_v43 }
 0x29a   :  { %1846 = vperm.xlu1 %3385, %v1692_v36   ;;  %v4250_v36 = vrot.slane %v1653_v34, %v756_v5 }
 0x29b   :  { %1791 = vperm.xlu0 %3386, %v1651_v30  }
 0x29e   :  { %1744 = vperm.xlu1 %3385, %v1667_v38   ;;  %v4252_v38 = vld [vmem:[#allocation7] ss:$0 sm:$0xff] }
 0x29f   :  { %1851 = vperm.xlu0 %3386, %v1691_v40   ;;  %v4257_v40 = vrot.slane %v1653_v34, %v872_v48 }
 0x2a2   :  { %1856 = vperm.xlu1 %3385, %v1706_v13  }
 0x2a3   :  { %1796 = vperm.xlu0 %3386, %v4126_v46  }
 0x2c8   :  { %v1308_v61 = vpop.permute.xlu1 %1307 }
 0x2c9   :  { %v1306_v41 = vpop.permute.xlu0 %1305  ;;  %v1363_v27 = vsel %vm1361_vm10, %v4057_v0, %v1308_v61 }
 0x2ca   :  { %v1362_v45 = vsel %vm1361_vm10, %v1265_v42, %v1306_v41 }
 0x2cc   :  { %v1312_v44 = vpop.permute.xlu1 %1311 }
 0x2cd   :  { %v1338_v11 = vpop.permute.xlu0 %1337  ;;  %v1365_v0 = vsel %vm1361_vm10, %v4070_v16, %v1312_v44 }
 0x2ce   :  { %v1371_v49 = vsel %vm1370_vm11, %v1362_v45, %v1338_v11 }
 0x2cf   :  { %3104 = vmatprep.mubr.msk.f32.mxu1 %vm1385_vm12, %v1371_v49 }
 0x2d0   :  { %v1340_v46 = vpop.permute.xlu1 %1339 }
 0x2d1   :  { %v1372_v50 = vsel %vm1370_vm11, %v1363_v27, %v1340_v46  ;;  %v1310_v52 = vpop.permute.xlu0 %1309 }
 0x2d2   :  { %3105 = vmatmul.mubr.msk.f32.vlgmr.msra.gmra.mrb[0].mxu1 %vm1385_vm12, %v1372_v50  ;;  %v1364_v51 = vsel %vm1361_vm10, %v4074_v17, %v1310_v52 }
 0x2d4   :  { %v1316_v47 = vpop.permute.xlu1 %1315 }
 0x2d5   :  { %v1342_v54 = vpop.permute.xlu0 %1341  ;;  %v1367_v1 = vsel %vm1361_vm10, %v4089_v29, %v1316_v47  ;;  %v1101_v29 = vld [vmem:[%s4645_s30] sm:$0xff] }
 0x2d6   :  { %v1373_v55 = vsel %vm1370_vm11, %v1364_v51, %v1342_v54 }
 0x2d7   :  { %3107 = vmatprep.mubr.msk.f32.mxu1 %vm1385_vm12, %v1373_v55 }
 0x2d8   :  { %v1320_v56 = vpop.permute.xlu1 %1319 }
 0x2d9   :  { %v1314_v57 = vpop.permute.xlu0 %1313  ;;  %v1369_v10 = vsel %vm1361_vm10, %v4110_v53, %v1320_v56 }
 0x2da   :  { %v1366_v60 = vsel %vm1361_vm10, %v1269_v58, %v1314_v57 }
 0x2dc   :  { %v1344_v59 = vpop.permute.xlu1 %1343 }
 0x2dd   :  { %v1374_v62 = vsel %vm1370_vm11, %v1365_v0, %v1344_v59  ;;  %v1346_v63 = vpop.permute.xlu0 %1345  ;;  %v4276_v59 = vld [vmem:[#allocation10] ss:$0 sm:$0xff] }
 0x2de   :  { %v1375_v17 = vsel %vm1370_vm11, %v1366_v60, %v1346_v63  ;;  %3108 = vmatmul.mubr.msk.f32.gmra.mrb[2].mxu1 %vm1385_vm12, %v1374_v62 }
 0x2df   :  { %3110 = vmatprep.mubr.msk.f32.mxu1 %vm1385_vm12, %v1375_v17 }
 0x2e0   :  { %v1348_v3 = vpop.permute.xlu1 %1347 }
 0x2e1   :  { %v1376_v26 = vsel %vm1370_vm11, %v1367_v1, %v1348_v3  ;;  %v1318_v4 = vpop.permute.xlu0 %1317 }
 0x2e2   :  { %3111 = vmatmul.mubr.msk.f32.gmra.mrb[4].mxu1 %vm1385_vm12, %v1376_v26  ;;  %v1368_v7 = vsel %vm1361_vm10, %v4114_v39, %v1318_v4 }
 0x2e4   :  { %v1352_v16 = vpop.permute.xlu1 %1351 }
 0x2e5   :  { %v1350_v8 = vpop.permute.xlu0 %1349  ;;  %v1378_v14 = vsel %vm1370_vm11, %v1369_v10, %v1352_v16 }
 0x2e6   :  { %v1377_v12 = vsel %vm1370_vm11, %v1368_v7, %v1350_v8 }
 0x2e7   :  { %3113 = vmatprep.mubr.msk.f32.mxu1 %vm1385_vm12, %v1377_v12 }
 0x2e8   :  { %3114 = vmatmul.mubr.msk.f32.gmra.mrb[6].mxu1 %vm1385_vm12, %v1378_v14 }
 0x2e9   :  { %3132 = vmatprep.mubr.msk.f32.mxu1 %vm1547_vm13, %v1101_v29 }
 0x2f5   :  { %v1715_v18 = vpop.permute.xlu1 %1714 }
 0x2f6   :  { %v1710_v39 = vpop.permute.xlu0 %1709  ;;  %v1752_v41 = vmul.f32 %v4246_v35, %v1715_v18 }
 0x2f7   :  { %v1751_v11 = vmul.f32 %v4246_v35, %v1710_v39 }
 0x2f9   :  { %v1762_v20 = vpop.permute.xlu1 %1761 }
 0x2fa   :  { %v1720_v19 = vpop.permute.xlu0 %1719  ;;  %v1803_v5 = vmul.f32 %v4250_v36, %v1762_v20 }
 0x2fb   :  { %v1753_v46 = vmul.f32 %v4246_v35, %v1720_v19 }
 0x2fc   :  { %v1811_v56 = vadd.f32 %v1803_v5, %v1751_v11 }
 0x2fd   :  { %v1772_v21 = vpop.permute.xlu1 %1771 }
 0x2fe   :  { %v1767_v53 = vpop.permute.xlu0 %1766  ;;  %v1805_v44 = vmul.f32 %v4250_v36, %v1772_v21 }
 0x2ff   :  { %v1804_v9 = vmul.f32 %v4250_v36, %v1767_v53 }
 0x300   :  { %v1813_v57 = vadd.f32 %v1805_v44, %v1753_v46 }
 0x301   :  { %v1827_v24 = vpop.permute.xlu1 %1826  ;;  %v1812_v49 = vadd.f32 %v1804_v9, %v1752_v41 }
 0x302   :  { %v1822_v22 = vpop.permute.xlu0 %1821  ;;  %v1864_v48 = vmul.f32 %v4257_v40, %v1827_v24 }
 0x303   :  { %v1863_v50 = vmul.f32 %v4257_v40, %v1822_v22 }
 0x304   :  { %v1872_v0 = vadd.f32 %v1864_v48, %v1812_v49 }
 0x305   :  { %v1725_v25 = vpop.permute.xlu1 %1724  ;;  %v1871_v60 = vadd.f32 %v1863_v50, %v1811_v56 }
 0x306   :  { %v1832_v23 = vpop.permute.xlu0 %1831  ;;  %v4282_v3 = vadd.f32 %v4276_v59, %v1872_v0  ;;  %v1754_v12 = vmul.f32 %v4246_v35, %v1725_v25 }
 0x307   :  { %v1865_v52 = vmul.f32 %v4257_v40, %v1832_v23  ;;  %v4286_v16 = vadd.f32 %v4276_v59, %v1871_v60 }
 0x308   :  { %v1894_v53 = vmax.f32 %v4282_v3, 0.0  ;;  %v1102_v3 = vld [vmem:[%s4645_s30 + $0x8] sm:$0xff] }
 0x309   :  { %v1777_v30 = vpop.permute.xlu1 %1776  ;;  %v1873_v62 = vadd.f32 %v1865_v52, %v1813_v57  ;;  %v1893_v24 = vmax.f32 %v4286_v16, 0.0 }
 0x30a   :  { %v1730_v28 = vpop.permute.xlu0 %1729  ;;  %v1806_v26 = vmul.f32 %v4250_v36, %v1777_v30 }
 0x30b   :  { %v4289_v7 = vadd.f32 %v4276_v59, %v1873_v62  ;;  %v1755_v18 = vmul.f32 %v4246_v35, %v1730_v28 }
 0x30c   :  { %v1814_v21 = vadd.f32 %v1806_v26, %v1754_v12 }
 0x30d   :  { %v1837_v32 = vpop.permute.xlu1 %1836  ;;  %v1895_v23 = vmax.f32 %v4289_v7, 0.0 }
 0x30e   :  { %v1782_v31 = vpop.permute.xlu0 %1781  ;;  %v1866_v14 = vmul.f32 %v4257_v40, %v1837_v32 }
 0x30f   :  { %v1807_v8 = vmul.f32 %v4250_v36, %v1782_v31 }
 0x310   :  { %v1874_v34 = vadd.f32 %v1866_v14, %v1814_v21 }
 0x311   :  { %v1735_v37 = vpop.permute.xlu1 %1734  ;;  %v1815_v25 = vadd.f32 %v1807_v8, %v1755_v18 }
 0x312   :  { %v1842_v33 = vpop.permute.xlu0 %1841 }
 0x313   :  { %v1867_v19 = vmul.f32 %v4257_v40, %v1842_v33 }
 0x315   :  { %v1787_v47 = vpop.permute.xlu1 %1786 }
 0x316   :  { %v4259_v13 = vpop.permute.xlu0 %1739 }
 0x317   :  { %v1757_v11 = vmul.f32 %v4246_v35, %v4259_v13 }
 0x319   :  { %v1847_v1 = vpop.permute.xlu1 %1846 }
 0x31a   :  { %v1792_v54 = vpop.permute.xlu0 %1791  ;;  %v1868_v13 = vmul.f32 %v4257_v40, %v1847_v1 }
 0x31b   :  { %v1809_v9 = vmul.f32 %v4250_v36, %v1792_v54 }
 0x31d   :  { %v1745_v30 = vpop.permute.xlu1 %1744 }
 0x31e   :  { %v1852_v4 = vpop.permute.xlu0 %1851  ;;  %v1758_v0 = vmul.f32 %v4246_v35, %v1745_v30 }
 0x31f   :  { %v1869_v49 = vmul.f32 %v4257_v40, %v1852_v4 }
 0x321   :  { %v1857_v26 = vpop.permute.xlu1 %1856 }
 0x322   :  { %v1797_v28 = vpop.permute.xlu0 %1796 }
 0x323   :  { %v1810_v46 = vmul.f32 %v4250_v36, %v1797_v28 }
 0x3a5   :  { %v3106_v61 = vpop.f32.mrb[0].mxu1 }
 0x3a6   :  { %v4263_v43 = vadd.f32 %v3106_v61, %v4252_v38  ;;  %v1476_v42 = vpop.f32.mrb[1].mxu1 }
 0x3a7   :  { %v1477_v45 = vadd.f32 %v4252_v38, %v1476_v42  ;;  %v1875_v42 = vadd.f32 %v1867_v19, %v1815_v25  ;;  %v1870_v19 = vmul.f32 %v4257_v40, %v1857_v26 }
 0x3a8   :  { %v1516_v27 = vmax.f32 %v4263_v43, 0.0  ;;  %v1756_v43 = vmul.f32 %v4246_v35, %v1735_v37  ;;  %v1888_v35 = vadd.f32 %v4276_v59, %v1874_v34  ;;  %v1902_v34 = vrot.slane %v1894_v53, 1 }
 0x3a9   :  { %v1515_v51 = vmax.f32 %v1477_v45, 0.0  ;;  %v1808_v45 = vmul.f32 %v4250_v36, %v1787_v47  ;;  %v4315_v47 = vadd.f32 %v4276_v59, %v1875_v42 }
 0x3aa   :  { %v1524_v55 = vrot.slane %v1516_v27, 1  ;;  %v1896_v40 = vmax.f32 %v1888_v35, 0.0  ;;  %v1658_v35 = vld [vmem:[%s4608_s10 + $0x18] sm:$0xff] }
 0x3ab   :  { %v4274_v58 = vrot.slane %v1515_v51, 1  ;;  %v1816_v62 = vadd.f32 %v1808_v45, %v1756_v43 }
 0x3ad   :  { %v1537_v63 = vsel %vm541_vm2, %v4274_v58, %v1524_v55  ;;  %v1876_v18 = vadd.f32 %v1868_v13, %v1816_v62 }
 0x3ae   :  { %v1539_v17 = vmax.f32 %v1515_v51, %v1537_v63  ;;  %v1817_v51 = vadd.f32 %v1809_v9, %v1757_v11 }
 0x3af   :  { %v1890_v28 = vadd.f32 %v4276_v59, %v1876_v18 }
 0x3b0   :  { %v1877_v63 = vadd.f32 %v1869_v49, %v1817_v51 }
 0x3b1   :  { %v3109_v10 = vpop.f32.mrb[2].mxu1 }
 0x3b2   :  { %v1492_v29 = vadd.f32 %v3109_v10, %v4252_v38  ;;  %v1486_v39 = vpop.f32.mrb[3].mxu1  ;;  %v1818_v10 = vadd.f32 %v1810_v46, %v1758_v0  ;;  %v1891_v30 = vadd.f32 %v4276_v59, %v1877_v63  ;;  %v1904_v46 = vrot.slane %v1896_v40, 1 }
 0x3b3   :  { %v1487_v20 = vadd.f32 %v4252_v38, %v1486_v39 }
 0x3b4   :  { %v1518_v22 = vmax.f32 %v1492_v29, 0.0 }
 0x3b5   :  { %v1517_v31 = vmax.f32 %v1487_v20, 0.0  ;;  %v3112_v32 = vpop.f32.mrb[4].mxu1 }
 0x3b6   :  { %v1526_v61 = vrot.slane %v1518_v22, 1  ;;  %v1502_v33 = vadd.f32 %v3112_v32, %v4252_v38  ;;  %v1496_v41 = vpop.f32.mrb[5].mxu1 }
 0x3b7   :  { %v1525_v5 = vrot.slane %v1517_v31, 1  ;;  %v1497_v44 = vadd.f32 %v4252_v38, %v1496_v41 }
 0x3b8   :  { %v1520_v48 = vmax.f32 %v1502_v33, 0.0 }
 0x3b9   :  { %v1535_v50 = vsel %vm541_vm2, %v1525_v5, %v1526_v61  ;;  %v1519_v52 = vmax.f32 %v1497_v44, 0.0  ;;  %v1536_v37 = vsel %vm541_vm2, %v1524_v55, %v1525_v5  ;;  %v1899_v44 = vmax.f32 %v1891_v30, 0.0 }
 0x3ba   :  { %v1541_v54 = vmax.f32 %v1517_v31, %v1535_v50  ;;  %v1528_v56 = vrot.slane %v1520_v48, 1  ;;  %v1540_v57 = vmax.f32 %v1516_v27, %v1536_v37  ;;  %v1878_v31 = vadd.f32 %v1870_v19, %v1818_v10  ;;  %v2022_v19 = vld [vmem:[%s4609_s11] sm:$0xff] }
 0x3bb   :  { %v1527_v60 = vrot.slane %v1519_v52, 1  ;;  %v3115_v36 = vpop.f32.mrb[6].mxu1  ;;  %v1898_v50 = vmax.f32 %v1890_v28, 0.0  ;;  %v1907_v51 = vrot.slane %v1899_v44, 1 }
 0x3bc   :  { %v1512_v4 = vadd.f32 %v3115_v36, %v4252_v38  ;;  %v1506_v8 = vpop.f32.mrb[7].mxu1  ;;  %v3290_v55 = vpack.c.bf16 %v1540_v57, %v1539_v17  ;;  %v1903_v17 = vrot.slane %v1895_v23, 1  ;;  %v1892_v45 = vadd.f32 %v4276_v59, %v1878_v31 }
 0x3bd   :  { %v1533_v27 = vsel %vm541_vm2, %v1527_v60, %v1528_v56  ;;  %v1507_v12 = vadd.f32 %v4252_v38, %v1506_v8  ;;  %v1534_v1 = vsel %vm541_vm2, %v1526_v61, %v1527_v60  ;;  %v1897_v38 = vmax.f32 %v4315_v47, 0.0 }
 0x3be   :  { %v1543_v14 = vmax.f32 %v1519_v52, %v1533_v27  ;;  %v1522_v29 = vmax.f32 %v1512_v4, 0.0  ;;  %3291 = vmatprep.subr.bf16.mxu1 %v3290_v55  ;;  %v1542_v39 = vmax.f32 %v1518_v22, %v1534_v1  ;;  %v1901_v22 = vrot.slane %v1893_v24, 1  ;;  %v1655_v4 = vld [vmem:[%s4608_s10] sm:$0xff]  ;;  %v1657_v1 = vld [vmem:[%s4608_s10 + $0x10] sm:$0xff] }
 0x3bf   :  { %v1521_v20 = vmax.f32 %v1507_v12, 0.0  ;;  %3293 = vmatpush3.bf16.msra.mxu1 %v3290_v55  ;;  %v1905_v5 = vrot.slane %v1897_v38, 1  ;;  %v1913_v57 = vsel %vm541_vm2, %v1903_v17, %v1904_v46  ;;  %v1656_v12 = vld [vmem:[%s4608_s10 + $0x8] sm:$0xff] }
 0x3c0   :  { %v1530_v21 = vrot.slane %v1522_v29, 1  ;;  %v3294_v25 = vpack.c.bf16 %v1542_v39, %v1541_v54  ;;  %v1915_v52 = vsel %vm541_vm2, %v1901_v22, %v1902_v34  ;;  %v1919_v16 = vmax.f32 %v1895_v23, %v1913_v57  ;;  %v1104_v23 = vld [vmem:[%s4645_s30 + $0x18] sm:$0xff] }
 0x3c1   :  { %v1529_v32 = vrot.slane %v1521_v20, 1  ;;  %v1912_v59 = vsel %vm541_vm2, %v1904_v46, %v1905_v5  ;;  %v1917_v54 = vmax.f32 %v1893_v24, %v1915_v52  ;;  %v1103_v24 = vld [vmem:[%s4645_s30 + $0x10] sm:$0xff] }
 0x3c2   :  { %v1538_v9 = vsel %vm541_vm2, %v1530_v21, %v4274_v58  ;;  %3295 = vmatprep.subr.bf16.mxu1 %v3294_v25  ;;  %v1914_v58 = vsel %vm541_vm2, %v1902_v34, %v1903_v17  ;;  %v1920_v13 = vmax.f32 %v1896_v40, %v1912_v59  ;;  %v174_v59 = vadd.s32 16, %v3756_v2 }
 0x3c3   :  { %v1546_v61 = vmax.f32 %v1522_v29, %v1538_v9  ;;  %v1531_v33 = vsel %vm541_vm2, %v1529_v32, %v1530_v21  ;;  %3297 = vmatpush3.bf16.msra.mxu1 %v3294_v25  ;;  %v1532_v41 = vsel %vm541_vm2, %v1528_v56, %v1529_v32  ;;  %v1918_v37 = vmax.f32 %v1894_v53, %v1914_v58  ;;  %v2024_v25 = vld [vmem:[%s4609_s11 + $0x10] sm:$0xff] }
 0x3c4   :  { %v1545_v43 = vmax.f32 %v1521_v20, %v1531_v33  ;;  %v1544_v42 = vmax.f32 %v1520_v48, %v1532_v41  ;;  %v1900_v48 = vmax.f32 %v1892_v45, 0.0  ;;  %v1906_v56 = vrot.slane %v1898_v50, 1  ;;  %v2023_v20 = vld [vmem:[%s4609_s11 + $0x8] sm:$0xff] }
 0x3c5   :  { %v3306_v47 = vpack.c.bf16 %v1918_v37, %v1917_v54  ;;  %v3310_v36 = vpack.c.bf16 %v1920_v13, %v1919_v16  ;;  %v3322_v17 = vpack.c.bf16 %v2023_v20, %v2022_v19  ;;  %v173_v21 = vadd.s32 8, %v3756_v2 }
 0x3c6   :  { %v3298_v11 = vpack.c.bf16 %v1544_v42, %v1543_v14  ;;  %v3302_v49 = vpack.c.bf16 %v1546_v61, %v1545_v43  ;;  %v1908_v0 = vrot.slane %v1900_v48, 1  ;;  %v1910_v53 = vsel %vm541_vm2, %v1906_v56, %v1907_v51 }
 0x3c7   :  { %v1911_v60 = vsel %vm541_vm2, %v1905_v5, %v1906_v56  ;;  %v1922_v62 = vmax.f32 %v1898_v50, %v1910_v53  ;;  %v2053_v9 = vand.u32 15, %v4061_v6 }
 0x3c8   :  { %3299 = vmatprep.subr.bf16.mxu1 %v3298_v11  ;;  %v1909_v63 = vsel %vm541_vm2, %v1907_v51, %v1908_v0  ;;  %v1916_v7 = vsel %vm541_vm2, %v1908_v0, %v1901_v22  ;;  %v1921_v26 = vmax.f32 %v1897_v38, %v1911_v60  ;;  %v2039_v38 = vand.u32 15, %v173_v21 }
 0x3c9   :  { %3301 = vmatpush3.bf16.msra.mxu1 %v3298_v11  ;;  %v1923_v55 = vmax.f32 %v1899_v44, %v1909_v63  ;;  %v1924_v10 = vmax.f32 %v1900_v48, %v1916_v7  ;;  %vm2091_vm15 = vcmp.lt.s32.totalorder %v2053_v9, 15  ;;  %v2032_v48 = vand.u32 15, %v3756_v2  ;;  %v2027_v2 = vld [vmem:[%s4611_s13 + $0x8] sm:$0xff] }
 0x3ca   :  { %3303 = vmatprep.subr.bf16.mxu1 %v3302_v49  ;;  %v3314_v8 = vpack.c.bf16 %v1922_v62, %v1921_v26  ;;  %vm2089_vm14 = vcmp.lt.s32.totalorder %v2039_v38, 15  ;;  %v2928_v37 = vsel %vm2091_vm15, 1.0, %v3558_v15 }
 0x3cb   :  { %v3318_v27 = vpack.c.bf16 %v1924_v10, %v1923_v55  ;;  %v2927_v45 = vsel %vm2089_vm14, 1.0, %v3558_v15  ;;  %vm2076_vm1 = vcmp.gt.s32.totalorder %v2032_v48, 0  ;;  %v2377_v48 = vld [vmem:[%s4615_s17 + $0x28] sm:$0xff] }
 0x3cc   :  { %v2925_v56 = vsel %vm2076_vm1, 1.0, %v3558_v15 }
 0x3cd   :  { %3305 = vmatpush3.bf16.msra.mxu1 %v3302_v49 }
 0x3ce   :  { %3307 = vmatprep.subr.bf16.mxu1 %v3306_v47 }
 0x3d0   :  { %3133 = vmatmul.mubr.msk.f32.vlgmr.msra.gmra.mrb[8].mxu1 %vm1547_vm13, %v1102_v3 }
 0x3d1   :  { %3309 = vmatpush3.bf16.msra.mxu1 %v3306_v47  ;;  %3135 = vmatprep.mubr.msk.f32.mxu1 %vm1547_vm13, %v1103_v24  ;;  %v2046_v47 = vand.u32 15, %v174_v59 }
 0x3d2   :  { %3311 = vmatprep.subr.bf16.mxu1 %v3310_v36 }
 0x3d4   :  { %3136 = vmatmul.mubr.msk.f32.gmra.mrb[10].mxu1 %vm1547_vm13, %v1104_v23 }
 0x3d5   :  { %3313 = vmatpush3.bf16.msra.mxu1 %v3310_v36  ;;  %3154 = vmatprep.mubr.msk.f32.mxu1 %vm1547_vm13, %v1655_v4 }
 0x3d6   :  { %3315 = vmatprep.subr.bf16.mxu1 %v3314_v8 }
 0x3d9   :  { %3317 = vmatpush3.bf16.msra.mxu1 %v3314_v8 }
 0x3da   :  { %3319 = vmatprep.subr.bf16.mxu1 %v3318_v27 }
 0x3dd   :  { %3321 = vmatpush3.bf16.msra.mxu1 %v3318_v27  ;;  %v2026_v27 = vld [vmem:[%s4611_s13] sm:$0xff]  ;;  %s3519_s13 = scalar_lea.vmem %s2887_s7, 32 }
 0x3de   :  { %3323 = vmatprep.subr.bf16.mxu1 %v3322_v17  ;;  %3180 = vmatprep.mubr.msk.f32.mxu0 %vm2283_vm3, %v2026_v27  ;;  %p3520_p6 = scmp.ne.s32.totalorder %s2887_s7, %s3519_s13  ;;  %p3525_p8 = scmp.lt.s32.totalorder %s3519_s13, %s3519_s13 }
 0x3e0   :  { %3155 = vmatmul.mubr.msk.f32.vlgmr.msra.gmra.mrb[12].mxu1 %vm1547_vm13, %v1656_v12  ;;  %v2929_v12 = vld [vmem:[%s4610_s12] ss:$0 sm:$0xff]  ;;  %p3526_p9 = por %p3525_p8, %p3524_p7 }
 0x3e1   :  { %3157 = vmatprep.mubr.msk.f32.mxu1 %vm1547_vm13, %v1657_v1  ;;  %3325 = vmatpush3.bf16.msra.mxu1 %v3322_v17 }
 0x3e2   :  { %3164 = vmatprep.subr.mxu1 %v2024_v25  ;;  %p3527_p10 = pnand %p3526_p9, %p3520_p6 }
 0x3e4   :  { %3158 = vmatmul.mubr.msk.f32.gmra.mrb[14].mxu1 %vm1547_vm13, %v1658_v35 }
 0x3e5   :  { %3165 = vmatpush3.msra.mxu1 %v2024_v25 }
 0x4a3   :  { %v4394_v14 = vpop.f32.mrb[8].mxu1 }
 0x4a4   :  { %v4396_v29 = vpop.f32.mrb[9].mxu1 }
 0x4a7   :  { %v4398_v39 = vpop.f32.mrb[10].mxu1 }
 0x4a8   :  { %v4400_v18 = vpop.f32.mrb[11].mxu1 }
 0x4b3   :  { %v3156_v30 = vpop.f32.mrb[12].mxu1 }
 0x4b4   :  { %v2101_v31 = vrot.slane %v3156_v30, 7  ;;  %v2113_v32 = vrot.slane %v3156_v30, 1  ;;  %2130 = vrot.lane.b32.xlu1 %v3156_v30, %s3559_s25  ;;  %v2003_v34 = vpop.f32.mrb[13].mxu1 }
 0x4b5   :  { %v2100_v22 = vrot.slane %v2003_v34, 7  ;;  %v2112_v40 = vrot.slane %v2003_v34, 1  ;;  %2128 = vrot.lane.b32.xlu0 %v2003_v34, %s3559_s25 }
 0x4b7   :  { %v3159_v28 = vpop.f32.mrb[14].mxu1  ;;  %v2118_v61 = vsel %vm541_vm2, %v2112_v40, %v2113_v32  ;;  %v2106_v33 = vsel %vm492_vm0, %v2100_v22, %v2101_v31 }
 0x4b8   :  { %v2103_v41 = vrot.slane %v3159_v28, 7  ;;  %v2115_v43 = vrot.slane %v3159_v28, 1  ;;  %2134 = vrot.lane.b32.xlu1 %v3159_v28, %s3559_s25  ;;  %v2013_v42 = vpop.f32.mrb[15].mxu1 }
 0x4b9   :  { %v2102_v5 = vrot.slane %v2013_v42, 7  ;;  %v2114_v44 = vrot.slane %v2013_v42, 1  ;;  %2144 = vrot.lane.b32.xlu0 %v2118_v61, %s3560_s28 }
 0x4ba   :  { %v2119_v6 = vsel %vm541_vm2, %v2115_v43, %v2112_v40  ;;  %v2107_v58 = vsel %vm492_vm0, %v2103_v41, %v2100_v22 }
 0x4bb   :  { %v2117_v11 = vsel %vm541_vm2, %v2113_v32, %v2114_v44  ;;  %v2116_v49 = vsel %vm541_vm2, %v2114_v44, %v2115_v43  ;;  %v2104_v50 = vsel %vm492_vm0, %v2102_v5, %v2103_v41  ;;  %v2105_v52 = vsel %vm492_vm0, %v2101_v31, %v2102_v5 }
 0x4bc   :  { %v2121_v46 = vmul.f32 %v2927_v45, %v2117_v11  ;;  %v2123_v51 = vmul.f32 %v2928_v37, %v2119_v6  ;;  %v2108_v13 = vmul.f32 %v2925_v56, %v2107_v58  ;;  %vm2078_vm0 = vcmp.gt.s32.totalorder %v2046_v47, 0  ;;  %v2365_v11 = vld [vmem:[%s4612_s14] sm:$0xff]  ;;  %v2379_v56 = vld [vmem:[%s4615_s17 + $0x38] sm:$0xff] }
 0x4bd   :  { %2132 = vrot.lane.b32.xlu0 %v2013_v42, %s3559_s25  ;;  %v2926_v24 = vsel %vm2078_vm0, 1.0, %v3558_v15 }
 0x4be   :  { %2146 = vrot.lane.b32.xlu1 %v2121_v46, %s3560_s28  ;;  %v2110_v63 = vmul.f32 %v2926_v24, %v2105_v52  ;;  %v2375_v52 = vld [vmem:[%s4615_s17 + $0x18] sm:$0xff] }
 0x4c1   :  { %2148 = vrot.lane.b32.xlu0 %v2116_v49, %s3560_s28  ;;  %v2366_v49 = vld [vmem:[%s4612_s14 + $0x8] sm:$0xff] }
 0x4c2   :  { %2150 = vrot.lane.b32.xlu1 %v2123_v51, %s3560_s28  ;;  %v3334_v46 = vpack.c.bf16 %v2366_v49, %v2365_v11  ;;  %v2376_v51 = vld [vmem:[%s4615_s17 + $0x20] sm:$0xff] }
 0x4c3   :  { %v3364_v59 = vpack.c.bf16 %v2377_v48, %v2376_v51 }
 0x526   :  { %v2131_v54 = vpop.permute.xlu1 %2130 }
 0x527   :  { %v2129_v57 = vpop.permute.xlu0 %2128  ;;  %v2157_v36 = vsel %vm1361_vm10, %v2106_v33, %v2131_v54  ;;  %v2378_v54 = vld [vmem:[%s4615_s17 + $0x30] sm:$0xff] }
 0x528   :  { %v2156_v0 = vsel %vm1361_vm10, %v2108_v13, %v2129_v57  ;;  %v3367_v57 = vpack.c.bf16 %v2379_v56, %v2378_v54 }
 0x52a   :  { %v2135_v53 = vpop.permute.xlu1 %2134 }
 0x52b   :  { %v2145_v3 = vpop.permute.xlu0 %2144  ;;  %v2159_v4 = vsel %vm1361_vm10, %v2104_v50, %v2135_v53  ;;  %v3561_v50 = vmov 0.0|0.0  }
 0x52c   :  { %v2160_v16 = vsel %vm1370_vm11, %v2156_v0, %v2145_v3  ;;  %3338 = vmatprep.subr.bf16.mxu1 %v3561_v50  ;;  %v2368_v0 = vld [vmem:[%s4613_s15 + $0x8] sm:$0xff]  ;;  %v2367_v3 = vld [vmem:[%s4613_s15] sm:$0xff] }
 0x52d   :  { %3166 = vmatprep.mubr.msk.f32.mxu1 %vm1385_vm12, %v2160_v16 }
 0x52f   :  { %v2133_v60 = vpop.permute.xlu0 %2132 }
 0x530   :  { %v2147_v62 = vpop.permute.xlu1 %2146  ;;  %v2158_v23 = vsel %vm1361_vm10, %v2110_v63, %v2133_v60 }
 0x531   :  { %v2161_v7 = vsel %vm1370_vm11, %v2157_v36, %v2147_v62  ;;  %v2370_v36 = vld [vmem:[%s4613_s15 + $0x18] sm:$0xff]  ;;  %v2369_v62 = vld [vmem:[%s4613_s15 + $0x10] sm:$0xff] }
 0x532   :  { %3167 = vmatmul.mubr.msk.f32.vlgmr.msra.gmra.mrb[16].mxu1 %vm1385_vm12, %v2161_v7 }
 0x533   :  { %v2149_v26 = vpop.permute.xlu0 %2148 }
 0x534   :  { %v2162_v8 = vsel %vm1370_vm11, %v2158_v23, %v2149_v26  ;;  %v2151_v55 = vpop.permute.xlu1 %2150  ;;  %v2556_v23 = vld [vmem:[%s4616_s18] sm:$0xff]  ;;  %v2557_v26 = vld [vmem:[%s4616_s18 + $0x8] sm:$0xff] }
 0x535   :  { %v2163_v10 = vsel %vm1370_vm11, %v2159_v4, %v2151_v55  ;;  %3169 = vmatprep.mubr.msk.f32.mxu1 %vm1385_vm12, %v2162_v8 }
 0x536   :  { %3170 = vmatmul.mubr.msk.f32.gmra.mrb[18].mxu1 %vm1385_vm12, %v2163_v10  ;;  %v3344_v10 = vpack.c.bf16 %v2557_v26, %v2556_v23 }
 0x605   :  { %v3168_v1 = vpop.f32.mrb[16].mxu1 }
 0x606   :  { %v2254_v35 = vadd.f32 %v3168_v1, %v2929_v12  ;;  %v2248_v19 = vpop.f32.mrb[17].mxu1  ;;  %v2380_v1 = vld [vmem:[%s4615_s17 + $0x40] sm:$0xff] }
 0x607   :  { %v2249_v20 = vadd.f32 %v2929_v12, %v2248_v19 }
 0x608   :  { %v2268_v17 = vmax.f32 %v2254_v35, 0.0  ;;  %v2381_v35 = vld [vmem:[%s4615_s17 + $0x48] sm:$0xff] }
 0x609   :  { %v2267_v21 = vmax.f32 %v2249_v20, 0.0  ;;  %v3171_v25 = vpop.f32.mrb[18].mxu1  ;;  %v3370_v19 = vpack.c.bf16 %v2381_v35, %v2380_v1 }
 0x60a   :  { %v2272_v38 = vrot.slane %v2268_v17, 1  ;;  %v2264_v30 = vadd.f32 %v3171_v25, %v2929_v12  ;;  %v2258_v31 = vpop.f32.mrb[19].mxu1  ;;  %v2558_v25 = vld [vmem:[%s4617_s19] sm:$0xff] }
 0x60b   :  { %v2271_v32 = vrot.slane %v2267_v21, 1  ;;  %v2259_v34 = vadd.f32 %v2929_v12, %v2258_v31  ;;  %v2371_v12 = vld [vmem:[%s4614_s16] sm:$0x3] }
 0x60c   :  { %v2270_v22 = vmax.f32 %v2264_v30, 0.0 }
 0x60d   :  { %v2277_v40 = vsel %vm541_vm2, %v2271_v32, %v2272_v38  ;;  %v2269_v9 = vmax.f32 %v2259_v34, 0.0  ;;  %v2561_v34 = vld [vmem:[%s4619_s21] sm:$0xff] }
 0x60e   :  { %v2279_v28 = vmax.f32 %v2267_v21, %v2277_v40  ;;  %v2274_v61 = vrot.slane %v2270_v22, 1  ;;  %v2559_v21 = vld [vmem:[%s4617_s19 + $0x8] sm:$0xff] }
 0x60f   :  { %v2273_v33 = vrot.slane %v2269_v9, 1 }
 0x610   :  { %v2278_v41 = vsel %vm541_vm2, %v2274_v61, %v2271_v32 }
 0x611   :  { %v2282_v43 = vmax.f32 %v2270_v22, %v2278_v41  ;;  %v2275_v42 = vsel %vm541_vm2, %v2273_v33, %v2274_v61  ;;  %v2276_v5 = vsel %vm541_vm2, %v2272_v38, %v2273_v33  ;;  %vm3562_vm2 = vmmov 0   ;;  %v2562_v22 = vld [vmem:[%s4619_s21 + $0x8] sm:$0xff]  ;;  %v2563_v61 = vld [vmem:[%s4619_s21 + $0x10] sm:$0xff]  ;;  %v2564_v33 = vld [vmem:[%s4619_s21 + $0x18] sm:$0xff] }
 0x612   :  { %v2281_v44 = vmax.f32 %v2269_v9, %v2275_v42  ;;  %v2280_v45 = vmax.f32 %v2268_v17, %v2276_v5  ;;  %3201 = vmatprep.mubr.msk.f32.mxu1 %vm3562_vm2, %v3558_v15  ;;  %v2560_v9 = vld [vmem:[%s4618_s20] sm:$0x3]  ;;  %v3355_v41 = vpack.c.bf16 %v2564_v33, %v2563_v61 }
 0x614   :  { %v3326_v6 = vpack.c.bf16 %v2280_v45, %v2279_v28  ;;  %v3330_v58 = vpack.c.bf16 %v2282_v43, %v2281_v44  ;;  %v3352_v28 = vpack.c.bf16 %v2562_v22, %v2561_v34  ;;  %v2565_v43 = vld [vmem:[%s4619_s21 + $0x20] sm:$0xff] }
 0x616   :  { %3327 = vmatprep.subr.bf16.mxu0 %v3326_v6 }
 0x617   :  { %3329 = vmatpush3.bf16.msra.mxu0 %v3326_v6 }
 0x618   :  { %3331 = vmatprep.subr.bf16.mxu0 %v3330_v58 }
 0x61b   :  { %3333 = vmatpush3.bf16.msra.mxu0 %v3330_v58  ;;  %v2946_v58 = vld [vmem:[#allocation11] ss:$0 sm:$0xff] }
 0x61c   :  { %3335 = vmatprep.subr.bf16.mxu0 %v3334_v46 }
 0x61e   :  { %3181 = vmatmul.mubr.msk.f32.vlgmr.msra.gmra.mrb[8].mxu0 %vm2283_vm3, %v2027_v2 }
 0x61f   :  { %3337 = vmatpush3.bf16.msra.mxu0 %v3334_v46  ;;  %3187 = vmatprep.mubr.msk.f32.mxu0 %vm1370_vm11, %v4396_v29  ;;  %v2373_v29 = vld [vmem:[%s4615_s17 + $0x8] sm:$0xff] }
 0x620   :  { %3357 = vmatprep.subr.bf16.mxu0 %v3561_v50 }
 0x622   :  { %3188 = vmatmul.mubr.msk.f32.vlgmr.msra.gmra.mrb[10].mxu0 %vm1370_vm11, %v4394_v14  ;;  %v2372_v14 = vld [vmem:[%s4615_s17] sm:$0xff] }
 0x623   :  { %3190 = vmatprep.mubr.msk.f32.mxu0 %vm1370_vm11, %v4400_v18  ;;  %v3358_v18 = vpack.c.bf16 %v2373_v29, %v2372_v14 }
 0x625   :  { %3359 = vmatpush3.bf16.msra.mxu0 %v3358_v18 }
 0x626   :  { %3191 = vmatmul.mubr.msk.f32.gmra.mrb[12].mxu0 %vm1370_vm11, %v4398_v39  ;;  %v2374_v39 = vld [vmem:[%s4615_s17 + $0x10] sm:$0xff]  ;;  %3360 = vmatprep.subr.bf16.mxu0 %v3561_v50 }
 0x627   :  { %3251 = vmatprep.mubr.msk.f32.mxu0 %vm3562_vm2, %v3558_v15  ;;  %v3361_v37 = vpack.c.bf16 %v2375_v52, %v2374_v39 }
 0x629   :  { %3362 = vmatpush3.bf16.msra.mxu0 %v3361_v37 }
 0x62a   :  { %3363 = vmatprep.subr.bf16.mxu0 %v3561_v50 }
 0x62d   :  { %3365 = vmatpush3.bf16.msra.mxu0 %v3364_v59 }
 0x62e   :  { %3366 = vmatprep.subr.bf16.mxu0 %v3561_v50 }
 0x631   :  { %3368 = vmatpush3.bf16.msra.mxu0 %v3367_v57 }
 0x632   :  { %3369 = vmatprep.subr.bf16.mxu0 %v3561_v50 }
 0x635   :  { %3371 = vmatpush3.bf16.msra.mxu0 %v3370_v19 }
 0x6f1   :  { %v3182_v47 = vpop.f32.mrb[8].mxu0 }
 0x6f2   :  { %v2356_v13 = vpop.f32.mrb[9].mxu0 }
 0x6f5   :  { %v3189_v53 = vpop.f32.mrb[10].mxu0 }
 0x6f6   :  { %v2480_v16 = vmul.f32 %v3189_v53, %v2368_v0  ;;  %v2460_v24 = vpop.f32.mrb[11].mxu0 }
 0x6f7   :  { %v2479_v60 = vmul.f32 %v2460_v24, %v2367_v3 }
 0x6f9   :  { %v3339_v63 = vpack.c.bf16 %v2480_v16, %v2479_v60  ;;  %v3192_v7 = vpop.f32.mrb[12].mxu0 }
 0x6fa   :  { %v2482_v4 = vmul.f32 %v3192_v7, %v2370_v36  ;;  %v2470_v8 = vpop.f32.mrb[13].mxu0 }
 0x6fb   :  { %v2481_v55 = vmul.f32 %v2470_v8, %v2369_v62  ;;  %3340 = vmatpush3.bf16.msra.mxu1 %v3339_v63 }
 0x6fc   :  { %3341 = vmatprep.subr.bf16.mxu1 %v3561_v50 }
 0x6fd   :  { %v3342_v27 = vpack.c.bf16 %v2482_v4, %v2481_v55 }
 0x6ff   :  { %3343 = vmatpush3.bf16.msra.mxu1 %v3342_v27 }
 0x700   :  { %3345 = vmatprep.subr.bf16.mxu1 %v3344_v10 }
 0x702   :  { %3202 = vmatmul.mubr.msk.f32.vlgmr.msra.gmra.mrb[20].mxu1 %vm2283_vm3, %v2371_v12 }
 0x703   :  { %3347 = vmatpush3.bf16.msra.mxu1 %v3344_v10  ;;  %3208 = vmatprep.mubr.msk.f32.mxu1 %vm1370_vm11, %v2356_v13 }
 0x704   :  { %3348 = vmatprep.subr.bf16.mxu1 %v3561_v50 }
 0x706   :  { %3209 = vmatmul.mubr.msk.f32.vlgmr.msra.gmra.mrb[22].mxu1 %vm1370_vm11, %v3182_v47 }
 0x707   :  { %3215 = vmatprep.mubr.msk.f32.mxu1 %vm3562_vm2, %v3558_v15 }
 0x7d5   :  { %v2552_v20 = vpop.f32.mrb[20].mxu1 }
 0x7d6   :  { %v3203_v17 = vpop.f32.mrb[21].mxu1  ;;  %3252 = vmatmul.mubr.msk.f32.vlgmr.msra.gmra.mrb[14].mxu0 %vm2796_vm4, %v2552_v20 }
 0x7d9   :  { %v3210_v38 = vpop.f32.mrb[22].mxu1 }
 0x7da   :  { %v2648_v30 = vmul.f32 %v3210_v38, %v2559_v21  ;;  %v2638_v31 = vpop.f32.mrb[23].mxu1 }
 0x7db   :  { %v2647_v32 = vmul.f32 %v2638_v31, %v2558_v25 }
 0x7dd   :  { %v3349_v40 = vpack.c.bf16 %v2648_v30, %v2647_v32 }
 0x7df   :  { %3350 = vmatpush3.bf16.msra.mxu1 %v3349_v40 }
 0x7e0   :  { %3351 = vmatprep.subr.bf16.mxu1 %v3561_v50 }
 0x7e2   :  { %3216 = vmatmul.mubr.msk.f32.vlgmr.msra.gmra.mrb[24].mxu1 %vm1370_vm11, %v2560_v9 }
 0x7e3   :  { %3353 = vmatpush3.bf16.msra.mxu1 %v3352_v28  ;;  %3228 = vmatprep.mubr.msk.f32.mxu1 %vm3562_vm2, %v3558_v15 }
 0x7e4   :  { %3354 = vmatprep.subr.bf16.mxu1 %v3561_v50 }
 0x7e7   :  { %3356 = vmatpush3.bf16.msra.mxu1 %v3355_v41 }
 0x7e8   :  { %3226 = vmatprep.subr.mxu1 %v3558_v15 }
 0x7eb   :  { %3227 = vmatpush3.msra.mxu1 %v2565_v43 }
 0x8a9   :  { %v2866_v42 = vpop.f32.mrb[14].mxu0 }
 0x8aa   :  { %v3253_v5 = vpop.f32.mrb[15].mxu0 }
 0x8b5   :  { %v2718_v44 = vpop.f32.mrb[24].mxu1 }
 0x8b6   :  { %3229 = vmatmul.mubr.msk.f32.vlgmr.msra.gmra.mrb[26].mxu1 %vm2722_vm5, %v2718_v44  ;;  %v3217_v45 = vpop.f32.mrb[25].mxu1 }
 0x989   :  { %v2792_v6 = vpop.f32.mrb[26].mxu1 }
 0x98a   :  { %v2867_v11 = vadd.f32 %v2866_v42, %v2792_v6  ;;  %v3230_v49 = vpop.f32.mrb[27].mxu1 }
 0x98c   :  { %v2877_v46 = vadd.f32 %v2946_v58, %v2867_v11 }
 0x98e   :  { %2879 = vst.msk [vmem:[#allocation13] sm:$0x3] %vm2878_vm6, %v2877_v46 }
 0x98f   :  { %3530 = shalt.err (!%p3527_p10)
}
 0x990   :  { %s3531_s4 = scalar_lea.hbm %s4621_s23, 32 }
 0x991   :  { %p3532_p11 = scmp.ne.s32.totalorder %s4621_s23, %s3531_s4  ;;  %p3535_p12 = scmp.lt.u32.totalorder %s3531_s4, %s4621_s23 }
 0x993   :  { %p3537_p13 = pnand %p3535_p12, %p3532_p11 }
 0x995   :  { %3540 = shalt.err (!%p3537_p13)
}
 0x996   :  { %2889 = dma.vmem_to_hbm [thread:$0]  %s2887_s7, 32, %s4621_s23, [#allocation4]  }
 0x997   :  { %3549 = dma.done.wait [#allocation4], 32  }
 0x998   :  { %3550 = vsyncadd [#allocation4], 4294967264 }
 0x999   :  { %2893 = vsyncpa [#allocation3], 1 }
 0x99a   :  { %2894 = vsyncpa [#allocation6], 1 }
 0x99b   :  { %2895 = vsyncpa [#allocation9], 1 }
 0x99c   :  { %2896 = vsyncpa [#allocation12], 1 }
 0x99d   :  { %2897 = vsyncpa [#allocation4], 1 }

</bundles_post_ra>
